<compile_context>
chip_gen: v7x
topology: tpu7x:2x2x1
jax: 0.10.0
libtpu: 0.0.40
codegen_flags: <defaults>
</compile_context>

<pallas_src>
import math

import jax
import jax.numpy as jnp
from jax.experimental import pallas as pl
from jax.experimental.pallas import tpu as pltpu

_EPS = 1e-5  # BatchNorm2d default eps


def _make_norm_act_conv_kernel(H, W, c_in, c_out, pad_rows,
                               with_residual, with_stats):
    """BN-affine + ReLU + 3x3 conv (stride 1, pad 1) [+ residual] [+ stats]."""
    HW = H * W

    def kernel(*refs):
        idx = 0
        x_ref = refs[idx]; idx += 1
        res_ref = None
        if with_residual:
            res_ref = refs[idx]; idx += 1
        scale_ref = refs[idx]; idx += 1
        shift_ref = refs[idx]; idx += 1
        w_ref = refs[idx]; idx += 1
        bias_ref = refs[idx]; idx += 1
        out_ref = refs[idx]; idx += 1
        stats_ref = None
        if with_stats:
            stats_ref = refs[idx]; idx += 1
        stage_ref = refs[idx]

        # Zero only the halo strips (top/bottom pad_rows rows).  The interior
        # is fully overwritten below.  Done every step (not hoisted behind
        # program_id==0): scratch is per-core and a megacore TC handling only
        # n>0 would otherwise never initialize it.
        halo = jnp.zeros((pad_rows, 3 * c_in), jnp.bfloat16)
        stage_ref[0:pad_rows, :] = halo
        stage_ref[pad_rows + HW:2 * pad_rows + HW, :] = halo

        # BatchNorm (precomputed scale/shift) + ReLU in f32; bf16 matmul operands.
        x = x_ref[0].astype(jnp.float32)                       # (HW, c_in)
        h = jnp.maximum(x * scale_ref[...] + shift_ref[...], 0.0)
        hb = h.astype(jnp.bfloat16)

        # x-shifted copies: mask the row-edge source pixels in f32 (native VPU
        # select on all generations), cast once, then rotate the bf16 copy.
        #   left[r]  = h[r-1] zeroed where dest x == 0   (src x == W-1)
        #   right[r] = h[r+1] zeroed where dest x == W-1 (src x == 0)
        xx = jax.lax.broadcasted_iota(jnp.int32, (HW, 1), 0) % W
        left = jnp.roll(jnp.where(xx == W - 1, 0.0, h).astype(jnp.bfloat16),
                        1, axis=0)
        right = jnp.roll(jnp.where(xx == 0, 0.0, h).astype(jnp.bfloat16),
                         -1, axis=0)
        stage_ref[pad_rows:pad_rows + HW, 0:c_in] = left
        stage_ref[pad_rows:pad_rows + HW, c_in:2 * c_in] = hb
        stage_ref[pad_rows:pad_rows + HW, 2 * c_in:3 * c_in] = right

        # 3 bf16 MXU matmuls (one per kernel row), K = 3*c_in, f32 accumulation.
        acc = jnp.dot(stage_ref[pad_rows - W:pad_rows - W + HW, :], w_ref[0],
                      preferred_element_type=jnp.float32)
        acc = acc + jnp.dot(stage_ref[pad_rows:pad_rows + HW, :], w_ref[1],
                            preferred_element_type=jnp.float32)
        acc = acc + jnp.dot(stage_ref[pad_rows + W:pad_rows + W + HW, :], w_ref[2],
                            preferred_element_type=jnp.float32)

        y = acc + bias_ref[...]                                # (1,c_out) broadcast
        if with_residual:
            y = y + res_ref[0].astype(jnp.float32)             # f32 residual add
        if with_stats:
            # Per-sample per-channel partials (f32) for the next BatchNorm.
            s0 = jnp.sum(y, axis=0, keepdims=True)
            s1 = jnp.sum(y * y, axis=0, keepdims=True)
            stats_ref[0] = jnp.concatenate([s0, s1], axis=0)
        out_ref[0] = y.astype(out_ref.dtype)

    return kernel


def _norm_act_conv(x3, scale, shift, w_grouped, bias, H, W, *,
                   residual=None, emit_stats=False, out_dtype=jnp.float32):
    """pallas_call wrapper: x3 is (N, H*W, Cin) bf16 -> (N, H*W, Cout) out_dtype
    (and optionally (N, 2, Cout) f32 sum / sum-of-squares partials)."""
    N, HW, c_in = x3.shape
    assert HW == H * W
    c_out = w_grouped.shape[-1]
    with_residual = residual is not None
    if with_residual:
        assert residual.shape == (N, HW, c_out)

    # Halo rows: >= W and a multiple of 16 so bf16 staging accesses stay
    # sublane-aligned when W is a multiple of 16.
    pad_rows = max(16, ((W + 15) // 16) * 16)
    stage_rows = 2 * pad_rows + HW

    kernel = _make_norm_act_conv_kernel(H, W, c_in, c_out, pad_rows,
                                        with_residual, emit_stats)

    in_specs = [pl.BlockSpec((1, HW, c_in), lambda n: (n, 0, 0))]
    args = [x3]
    if with_residual:
        in_specs.append(pl.BlockSpec((1, HW, c_out), lambda n: (n, 0, 0)))
        args.append(residual)
    in_specs += [
        pl.BlockSpec((1, c_in), lambda n: (0, 0)),                 # BN scale
        pl.BlockSpec((1, c_in), lambda n: (0, 0)),                 # BN shift
        pl.BlockSpec((3, 3 * c_in, c_out), lambda n: (0, 0, 0)),   # grouped weights
        pl.BlockSpec((1, c_out), lambda n: (0, 0)),                # conv bias
    ]
    args += [scale, shift, w_grouped, bias]

    out_shapes = [jax.ShapeDtypeStruct((N, HW, c_out), out_dtype)]
    out_specs = [pl.BlockSpec((1, HW, c_out), lambda n: (n, 0, 0))]
    if emit_stats:
        out_shapes.append(jax.ShapeDtypeStruct((N, 2, c_out), jnp.float32))
        out_specs.append(pl.BlockSpec((1, 2, c_out), lambda n: (n, 0, 0)))

    # VMEM budget: double-buffered per-sample blocks + resident weights +
    # staging scratch + in-kernel f32/bf16 temporaries, clamped to <= 3/4 of
    # physical VMEM (generation-aware; leaves headroom for compiler scratch).
    out_bytes = jnp.dtype(out_dtype).itemsize
    block_bytes = HW * (2 * c_in
                        + (2 * c_out if with_residual else 0)
                        + out_bytes * c_out)
    weight_bytes = 2 * 3 * 3 * c_in * c_out
    stage_bytes = 2 * stage_rows * 3 * c_in
    temp_bytes = 6 * HW * max(c_in, c_out) * 4
    budget = 2 * (block_bytes + weight_bytes) + stage_bytes + temp_bytes + (2 << 20)
    try:
        cap = int(pltpu.get_tpu_info().vmem_capacity_bytes)
    except Exception:  # fall back to the smallest current generation (v7x)
        cap = 64 << 20
    vmem_limit = min((cap * 3) // 4, max(32 << 20, budget))

    result = pl.pallas_call(
        kernel,
        out_shape=tuple(out_shapes) if emit_stats else out_shapes[0],
        grid=(N,),
        in_specs=in_specs,
        out_specs=tuple(out_specs) if emit_stats else out_specs[0],
        scratch_shapes=[pltpu.VMEM((stage_rows, 3 * c_in), jnp.bfloat16)],
        compiler_params=pltpu.CompilerParams(
            dimension_semantics=("parallel",),
            vmem_limit_bytes=int(vmem_limit)),
    )(*args)
    return result


def _bn_affine(gamma, beta, mean, var):
    scale = gamma.astype(jnp.float32) * jax.lax.rsqrt(var.astype(jnp.float32) + _EPS)
    shift = beta.astype(jnp.float32) - mean.astype(jnp.float32) * scale
    return scale.reshape(1, -1), shift.reshape(1, -1)


def pre_basic_block(x_nchw, params):
    """Forward pass of PreBasicBlock (stride=1 config). NCHW in / NCHW out (f32)."""
    N, c_in, H, W = x_nchw.shape
    c_out = params["w2"].shape[-1]
    assert params["w1"].shape == (3, 3, c_in, c_out)
    assert c_in == c_out, "identity skip path requires in_channels == out_channels"
    HW = H * W

    # NCHW -> (N, HW, C); the f32->bf16 cast fuses into the layout copy so all
    # downstream HBM activation traffic is bf16.
    x3 = (jnp.transpose(x_nchw, (0, 2, 3, 1))
          .reshape(N, HW, c_in).astype(jnp.bfloat16))

    # Conv weights grouped by kernel row: (ky, kx*Cin, Cout), bf16 MXU operands.
    w1g = params["w1"].reshape(3, 3 * c_in, c_out).astype(jnp.bfloat16)
    w2g = params["w2"].reshape(3, 3 * c_out, c_out).astype(jnp.bfloat16)
    cb1 = params["cb1"].reshape(1, c_out).astype(jnp.float32)
    cb2 = params["cb2"].reshape(1, c_out).astype(jnp.float32)

    # BN1 batch statistics (global over N*H*W, biased variance) in plain JAX.
    x3f = x3.astype(jnp.float32)
    s1, t1 = _bn_affine(params["g1"], params["b1"],
                        jnp.mean(x3f, axis=(0, 1)), jnp.var(x3f, axis=(0, 1)))

    # norm1 + relu + conv1, with BN2 partial sums fused in (c1 stays bf16 and
    # is never re-read for statistics).
    c1, stats = _norm_act_conv(x3, s1, t1, w1g, cb1, H, W,
                               emit_stats=True, out_dtype=jnp.bfloat16)
    tot = jnp.sum(stats, axis=0)                       # (2, c_out) f32
    cnt = float(N * HW)
    mu2 = tot[0] / cnt
    var2 = jnp.maximum(tot[1] / cnt - mu2 * mu2, 0.0)  # biased variance
    s2, t2 = _bn_affine(params["g2"], params["b2"], mu2, var2)

    # norm2 + relu + conv2 + identity skip (f32 output).
    out3 = _norm_act_conv(c1, s2, t2, w2g, cb2, H, W,
                          residual=x3, out_dtype=jnp.float32)

    return jnp.transpose(out3.reshape(N, H, W, c_out), (0, 3, 1, 2))


def _reference(x_nchw, p):
    """Pure-JAX (f32) reference of the same forward pass (for verification)."""
    x = jnp.transpose(x_nchw, (0, 2, 3, 1)).astype(jnp.float32)

    def bn_relu(v, g, b):
        mu = v.mean(axis=(0, 1, 2), keepdims=True)
        var = ((v - mu) ** 2).mean(axis=(0, 1, 2), keepdims=True)
        return jax.nn.relu((v - mu) / jnp.sqrt(var + _EPS) * g + b)

    def conv(v, w, cb):
        y = jax.lax.conv_general_dilated(
            v, w, window_strides=(1, 1), padding="SAME",
            dimension_numbers=("NHWC", "HWIO", "NHWC"))
        return y + cb.reshape(1, 1, 1, -1)

    h = bn_relu(x, p["g1"].reshape(1, 1, 1, -1), p["b1"].reshape(1, 1, 1, -1))
    h = conv(h, p["w1"], p["cb1"])
    h = bn_relu(h, p["g2"].reshape(1, 1, 1, -1), p["b2"].reshape(1, 1, 1, -1))
    h = conv(h, p["w2"], p["cb2"])
    out = h + x
    return jnp.transpose(out, (0, 3, 1, 2))


if __name__ == "__main__":
    key = jax.random.PRNGKey(0)
    kx, kw1, kb1, kw2, kb2 = jax.random.split(key, 5)
    N, Cin, Cout, H, W = 2, 4, 4, 16, 16

    x = jax.random.normal(kx, (N, Cin, H, W), dtype=jnp.float32)

    fan1 = Cin * 3 * 3
    fan2 = Cout * 3 * 3
    params = {
        # BatchNorm affine params (PyTorch defaults: gamma=1, beta=0)
        "g1": jnp.ones((Cin,), jnp.float32),
        "b1": jnp.zeros((Cin,), jnp.float32),
        "g2": jnp.ones((Cout,), jnp.float32),
        "b2": jnp.zeros((Cout,), jnp.float32),
        # Conv weights (HWIO), kaiming-normal-like scale; biases uniform.
        "w1": jax.random.normal(kw1, (3, 3, Cin, Cout), jnp.float32)
              * math.sqrt(2.0 / fan1),
        "cb1": jax.random.uniform(kb1, (Cout,), jnp.float32,
                                  -1.0 / math.sqrt(fan1), 1.0 / math.sqrt(fan1)),
        "w2": jax.random.normal(kw2, (3, 3, Cout, Cout), jnp.float32)
              * math.sqrt(2.0 / fan2),
        "cb2": jax.random.uniform(kb2, (Cout,), jnp.float32,
                                  -1.0 / math.sqrt(fan2), 1.0 / math.sqrt(fan2)),
    }

    out = jax.block_until_ready(pre_basic_block(x, params))
    ref = _reference(x, params)
    assert out.shape == (N, Cout, H, W)

    # bf16 activation I/O + bf16 MXU operands (f32 accumulation): check both a
    # magnitude-normalized error (catches structural/indexing bugs) and a loose
    # elementwise bound.
    max_err = float(jnp.max(jnp.abs(out - ref)))
    rel_err = float(jnp.linalg.norm(out - ref) / jnp.linalg.norm(ref))
    assert rel_err < 2e-2, (rel_err, max_err)
    assert max_err < 1e-1, (rel_err, max_err)
    print("KERNEL_OK")
</pallas_src>

<mosaic_0001>
module attributes {stable_mosaic.version = 11 : i64} {
  func.func @kernel(%arg0: i32, %arg1: memref<1x256x4xbf16, #tpu.memory_space<vmem>>, %arg2: memref<1x4xf32, #tpu.memory_space<vmem>>, %arg3: memref<1x4xf32, #tpu.memory_space<vmem>>, %arg4: memref<3x12x4xbf16, #tpu.memory_space<vmem>>, %arg5: memref<1x4xf32, #tpu.memory_space<vmem>>, %arg6: memref<1x256x4xbf16, #tpu.memory_space<vmem>>, %arg7: memref<1x2x4xf32, #tpu.memory_space<vmem>>, %arg8: memref<288x12xbf16, #tpu.memory_space<vmem>>) attributes {dimension_semantics = [#tpu.dimension_semantics<parallel>], iteration_bounds = array<i64: 2>, scalar_prefetch = 0 : i64, scratch_operands = 1 : i64, tpu.core_type = #tpu.core_type<tc>, window_params = [{transform_indices = @transform_0, window_bounds = array<i64: 1, 256, 4>}, {pipeline_mode = #tpu.pipeline_mode<synchronous>, transform_indices = @transform_1, window_bounds = array<i64: 1, 4>}, {pipeline_mode = #tpu.pipeline_mode<synchronous>, transform_indices = @transform_2, window_bounds = array<i64: 1, 4>}, {pipeline_mode = #tpu.pipeline_mode<synchronous>, transform_indices = @transform_3, window_bounds = array<i64: 3, 12, 4>}, {pipeline_mode = #tpu.pipeline_mode<synchronous>, transform_indices = @transform_4, window_bounds = array<i64: 1, 4>}, {transform_indices = @transform_5, window_bounds = array<i64: 1, 256, 4>}, {transform_indices = @transform_6, window_bounds = array<i64: 1, 2, 4>}]} {
    %cst = arith.constant 0.000000e+00 : bf16
    %0 = vector.broadcast %cst : bf16 to vector<16x12xbf16>
    %c0 = arith.constant 0 : index
    %c0_0 = arith.constant 0 : index
    %1 = vector.load %arg8[%c0, %c0_0] : memref<288x12xbf16, #tpu.memory_space<vmem>>, vector<16x12xbf16>
    tpu.vector_store %arg8[%c0, %c0_0], %0 {strides = array<i32>} : memref<288x12xbf16, #tpu.memory_space<vmem>>, vector<16x12xbf16>,
    %c272 = arith.constant 272 : index
    %c0_1 = arith.constant 0 : index
    %2 = vector.load %arg8[%c272, %c0_1] : memref<288x12xbf16, #tpu.memory_space<vmem>>, vector<16x12xbf16>
    tpu.vector_store %arg8[%c272, %c0_1], %0 {strides = array<i32>} : memref<288x12xbf16, #tpu.memory_space<vmem>>, vector<16x12xbf16>,
    %c0_2 = arith.constant 0 : index
    %c0_3 = arith.constant 0 : index
    %c0_4 = arith.constant 0 : index
    %3 = vector.load %arg1[%c0_2, %c0_3, %c0_4] : memref<1x256x4xbf16, #tpu.memory_space<vmem>>, vector<1x256x4xbf16>
    %4 = vector.shape_cast %3 : vector<1x256x4xbf16> to vector<256x4xbf16>
    %5 = arith.extf %4 : vector<256x4xbf16> to vector<256x4xf32>
    %c0_5 = arith.constant 0 : index
    %c0_6 = arith.constant 0 : index
    %6 = vector.load %arg2[%c0_5, %c0_6] : memref<1x4xf32, #tpu.memory_space<vmem>>, vector<1x4xf32>
    %7 = vector.broadcast %6 : vector<1x4xf32> to vector<256x4xf32>
    %8 = arith.mulf %5, %7 : vector<256x4xf32>
    %c0_7 = arith.constant 0 : index
    %c0_8 = arith.constant 0 : index
    %9 = vector.load %arg3[%c0_7, %c0_8] : memref<1x4xf32, #tpu.memory_space<vmem>>, vector<1x4xf32>
    %10 = vector.broadcast %9 : vector<1x4xf32> to vector<256x4xf32>
    %11 = arith.addf %8, %10 : vector<256x4xf32>
    %cst_9 = arith.constant 0.000000e+00 : f32
    %12 = vector.broadcast %cst_9 : f32 to vector<256x4xf32>
    %13 = arith.maximumf %11, %12 : vector<256x4xf32>
    %14 = arith.truncf %13 : vector<256x4xf32> to vector<256x4xbf16>
    %15 = tpu.iota {dimensions = array<i32: 0>} : vector<256x1xi32>
    %c16_i32 = arith.constant 16 : i32
    %c0_i32 = arith.constant 0 : i32
    %16 = arith.cmpi eq, %c16_i32, %c0_i32 : i32
    %c1_i32 = arith.constant 1 : i32
    %17 = arith.select %16, %c1_i32, %c16_i32 : i32
    %18 = vector.broadcast %17 : i32 to vector<256x1xi32>
    %19 = arith.remsi %15, %18 : vector<256x1xi32>
    %c0_i32_10 = arith.constant 0 : i32
    %20 = vector.broadcast %c0_i32_10 : i32 to vector<256x1xi32>
    %21 = arith.cmpi ne, %19, %20 : vector<256x1xi32>
    %c0_i32_11 = arith.constant 0 : i32
    %22 = vector.broadcast %c0_i32_11 : i32 to vector<256x1xi32>
    %23 = arith.cmpi slt, %19, %22 : vector<256x1xi32>
    %c0_i32_12 = arith.constant 0 : i32
    %24 = arith.cmpi slt, %17, %c0_i32_12 : i32
    %25 = vector.broadcast %24 : i1 to vector<256x1xi1>
    %26 = vector.broadcast %25 : vector<256x1xi1> to vector<256x1xi1>
    %27 = arith.xori %23, %26 : vector<256x1xi1>
    %28 = arith.andi %27, %21 : vector<256x1xi1>
    %29 = vector.broadcast %17 : i32 to vector<256x1xi32>
    %30 = arith.addi %19, %29 : vector<256x1xi32>
    %31 = arith.select %28, %30, %19 : vector<256x1xi1>, vector<256x1xi32>
    %c15_i32 = arith.constant 15 : i32
    %32 = vector.broadcast %c15_i32 : i32 to vector<256x1xi32>
    %33 = arith.cmpi eq, %31, %32 : vector<256x1xi32>
    %cst_13 = arith.constant 0.000000e+00 : f32
    %34 = vector.shape_cast %33 : vector<256x1xi1> to vector<256x1xi1>
    %35 = vector.broadcast %34 : vector<256x1xi1> to vector<256x4xi1>
    %36 = vector.broadcast %cst_13 : f32 to vector<256x4xf32>
    %37 = arith.select %35, %36, %13 : vector<256x4xi1>, vector<256x4xf32>
    %38 = arith.truncf %37 : vector<256x4xf32> to vector<256x4xbf16>
    %39 = vector.extract_strided_slice %38 {offsets = [255, 0], sizes = [1, 4], strides = [1, 1]} : vector<256x4xbf16> to vector<1x4xbf16>
    %40 = vector.extract_strided_slice %38 {offsets = [0, 0], sizes = [255, 4], strides = [1, 1]} : vector<256x4xbf16> to vector<255x4xbf16>
    %41 = tpu.concatenate %39, %40 in 0 : vector<1x4xbf16>, vector<255x4xbf16> -> vector<256x4xbf16>
    %c0_i32_14 = arith.constant 0 : i32
    %42 = vector.broadcast %c0_i32_14 : i32 to vector<256x1xi32>
    %43 = arith.cmpi eq, %31, %42 : vector<256x1xi32>
    %cst_15 = arith.constant 0.000000e+00 : f32
    %44 = vector.shape_cast %43 : vector<256x1xi1> to vector<256x1xi1>
    %45 = vector.broadcast %44 : vector<256x1xi1> to vector<256x4xi1>
    %46 = vector.broadcast %cst_15 : f32 to vector<256x4xf32>
    %47 = arith.select %45, %46, %13 : vector<256x4xi1>, vector<256x4xf32>
    %48 = arith.truncf %47 : vector<256x4xf32> to vector<256x4xbf16>
    %49 = vector.extract_strided_slice %48 {offsets = [1, 0], sizes = [255, 4], strides = [1, 1]} : vector<256x4xbf16> to vector<255x4xbf16>
    %50 = vector.extract_strided_slice %48 {offsets = [0, 0], sizes = [1, 4], strides = [1, 1]} : vector<256x4xbf16> to vector<1x4xbf16>
    %51 = tpu.concatenate %49, %50 in 0 : vector<255x4xbf16>, vector<1x4xbf16> -> vector<256x4xbf16>
    %c16 = arith.constant 16 : index
    %c0_16 = arith.constant 0 : index
    %52 = vector.load %arg8[%c16, %c0_16] : memref<288x12xbf16, #tpu.memory_space<vmem>>, vector<256x4xbf16>
    tpu.vector_store %arg8[%c16, %c0_16], %41 {strides = array<i32>} : memref<288x12xbf16, #tpu.memory_space<vmem>>, vector<256x4xbf16>,
    %c16_17 = arith.constant 16 : index
    %c4 = arith.constant 4 : index
    %53 = vector.load %arg8[%c16_17, %c4] : memref<288x12xbf16, #tpu.memory_space<vmem>>, vector<256x4xbf16>
    tpu.vector_store %arg8[%c16_17, %c4], %14 {strides = array<i32>} : memref<288x12xbf16, #tpu.memory_space<vmem>>, vector<256x4xbf16>,
    %c16_18 = arith.constant 16 : index
    %c8 = arith.constant 8 : index
    %54 = vector.load %arg8[%c16_18, %c8] : memref<288x12xbf16, #tpu.memory_space<vmem>>, vector<256x4xbf16>
    tpu.vector_store %arg8[%c16_18, %c8], %51 {strides = array<i32>} : memref<288x12xbf16, #tpu.memory_space<vmem>>, vector<256x4xbf16>,
    %c0_19 = arith.constant 0 : index
    %c0_20 = arith.constant 0 : index
    %55 = vector.load %arg8[%c0_19, %c0_20] : memref<288x12xbf16, #tpu.memory_space<vmem>>, vector<256x12xbf16>
    %c0_21 = arith.constant 0 : index
    %c0_22 = arith.constant 0 : index
    %c0_23 = arith.constant 0 : index
    %56 = vector.load %arg4[%c0_21, %c0_22, %c0_23] : memref<3x12x4xbf16, #tpu.memory_space<vmem>>, vector<1x12x4xbf16>
    %57 = vector.shape_cast %56 : vector<1x12x4xbf16> to vector<12x4xbf16>
    %cst_24 = arith.constant dense<0.000000e+00> : vector<256x4xf32>
    %58 = tpu.matmul %55, %57, %cst_24 {dimension_numbers = #tpu.dot_dimension_numbers<[1], [0], [0], [1], [0, 0, 1, 1], [], []>} : vector<256x12xbf16>, vector<12x4xbf16>, vector<256x4xf32> -> vector<256x4xf32>
    %c16_25 = arith.constant 16 : index
    %c0_26 = arith.constant 0 : index
    %59 = vector.load %arg8[%c16_25, %c0_26] : memref<288x12xbf16, #tpu.memory_space<vmem>>, vector<256x12xbf16>
    %c1 = arith.constant 1 : index
    %c0_27 = arith.constant 0 : index
    %c0_28 = arith.constant 0 : index
    %60 = vector.load %arg4[%c1, %c0_27, %c0_28] : memref<3x12x4xbf16, #tpu.memory_space<vmem>>, vector<1x12x4xbf16>
    %61 = vector.shape_cast %60 : vector<1x12x4xbf16> to vector<12x4xbf16>
    %cst_29 = arith.constant dense<0.000000e+00> : vector<256x4xf32>
    %62 = tpu.matmul %59, %61, %cst_29 {dimension_numbers = #tpu.dot_dimension_numbers<[1], [0], [0], [1], [0, 0, 1, 1], [], []>} : vector<256x12xbf16>, vector<12x4xbf16>, vector<256x4xf32> -> vector<256x4xf32>
    %63 = arith.addf %58, %62 : vector<256x4xf32>
    %c32 = arith.constant 32 : index
    %c0_30 = arith.constant 0 : index
    %64 = vector.load %arg8[%c32, %c0_30] : memref<288x12xbf16, #tpu.memory_space<vmem>>, vector<256x12xbf16>
    %c2 = arith.constant 2 : index
    %c0_31 = arith.constant 0 : index
    %c0_32 = arith.constant 0 : index
    %65 = vector.load %arg4[%c2, %c0_31, %c0_32] : memref<3x12x4xbf16, #tpu.memory_space<vmem>>, vector<1x12x4xbf16>
    %66 = vector.shape_cast %65 : vector<1x12x4xbf16> to vector<12x4xbf16>
    %cst_33 = arith.constant dense<0.000000e+00> : vector<256x4xf32>
    %67 = tpu.matmul %64, %66, %cst_33 {dimension_numbers = #tpu.dot_dimension_numbers<[1], [0], [0], [1], [0, 0, 1, 1], [], []>} : vector<256x12xbf16>, vector<12x4xbf16>, vector<256x4xf32> -> vector<256x4xf32>
    %68 = arith.addf %63, %67 : vector<256x4xf32>
    %c0_34 = arith.constant 0 : index
    %c0_35 = arith.constant 0 : index
    %69 = vector.load %arg5[%c0_34, %c0_35] : memref<1x4xf32, #tpu.memory_space<vmem>>, vector<1x4xf32>
    %70 = vector.broadcast %69 : vector<1x4xf32> to vector<256x4xf32>
    %71 = arith.addf %68, %70 : vector<256x4xf32>
    %cst_36 = arith.constant dense<0.000000e+00> : vector<4xf32>
    %72 = vector.multi_reduction <add>, %71, %cst_36 [0] : vector<256x4xf32> to vector<4xf32>
    %73 = vector.shape_cast %72 : vector<4xf32> to vector<1x4xf32>
    %74 = arith.mulf %71, %71 : vector<256x4xf32>
    %cst_37 = arith.constant dense<0.000000e+00> : vector<4xf32>
    %75 = vector.multi_reduction <add>, %74, %cst_37 [0] : vector<256x4xf32> to vector<4xf32>
    %76 = vector.shape_cast %75 : vector<4xf32> to vector<1x4xf32>
    %77 = tpu.concatenate %73, %76 in 0 : vector<1x4xf32>, vector<1x4xf32> -> vector<2x4xf32>
    %c0_38 = arith.constant 0 : index
    %c0_39 = arith.constant 0 : index
    %c0_40 = arith.constant 0 : index
    %78 = vector.load %arg7[%c0_38, %c0_39, %c0_40] : memref<1x2x4xf32, #tpu.memory_space<vmem>>, vector<1x2x4xf32>
    %79 = vector.shape_cast %78 : vector<1x2x4xf32> to vector<2x4xf32>
    %80 = vector.shape_cast %77 : vector<2x4xf32> to vector<1x2x4xf32>
    tpu.vector_store %arg7[%c0_38, %c0_39, %c0_40], %80 {strides = array<i32>} : memref<1x2x4xf32, #tpu.memory_space<vmem>>, vector<1x2x4xf32>,
    %81 = arith.truncf %71 : vector<256x4xf32> to vector<256x4xbf16>
    %c0_41 = arith.constant 0 : index
    %c0_42 = arith.constant 0 : index
    %c0_43 = arith.constant 0 : index
    %82 = vector.load %arg6[%c0_41, %c0_42, %c0_43] : memref<1x256x4xbf16, #tpu.memory_space<vmem>>, vector<1x256x4xbf16>
    %83 = vector.shape_cast %82 : vector<1x256x4xbf16> to vector<256x4xbf16>
    %84 = vector.shape_cast %81 : vector<256x4xbf16> to vector<1x256x4xbf16>
    tpu.vector_store %arg6[%c0_41, %c0_42, %c0_43], %84 {strides = array<i32>} : memref<1x256x4xbf16, #tpu.memory_space<vmem>>, vector<1x256x4xbf16>,
    return
  }
  func.func @transform_0(%arg0: i32) -> (i32, i32, i32) {
    %c0_i32 = arith.constant 0 : i32
    %c0_i32_0 = arith.constant 0 : i32
    %c0_i32_1 = arith.constant 0 : i32
    return %arg0, %c0_i32, %c0_i32_0 : i32, i32, i32
  }
  func.func @transform_1(%arg0: i32) -> (i32, i32) {
    %c0_i32 = arith.constant 0 : i32
    %c0_i32_0 = arith.constant 0 : i32
    %c0_i32_1 = arith.constant 0 : i32
    return %c0_i32, %c0_i32_0 : i32, i32
  }
  func.func @transform_2(%arg0: i32) -> (i32, i32) {
    %c0_i32 = arith.constant 0 : i32
    %c0_i32_0 = arith.constant 0 : i32
    %c0_i32_1 = arith.constant 0 : i32
    return %c0_i32, %c0_i32_0 : i32, i32
  }
  func.func @transform_3(%arg0: i32) -> (i32, i32, i32) {
    %c0_i32 = arith.constant 0 : i32
    %c0_i32_0 = arith.constant 0 : i32
    %c0_i32_1 = arith.constant 0 : i32
    %c0_i32_2 = arith.constant 0 : i32
    return %c0_i32, %c0_i32_0, %c0_i32_1 : i32, i32, i32
  }
  func.func @transform_4(%arg0: i32) -> (i32, i32) {
    %c0_i32 = arith.constant 0 : i32
    %c0_i32_0 = arith.constant 0 : i32
    %c0_i32_1 = arith.constant 0 : i32
    return %c0_i32, %c0_i32_0 : i32, i32
  }
  func.func @transform_5(%arg0: i32) -> (i32, i32, i32) {
    %c0_i32 = arith.constant 0 : i32
    %c0_i32_0 = arith.constant 0 : i32
    %c0_i32_1 = arith.constant 0 : i32
    return %arg0, %c0_i32, %c0_i32_0 : i32, i32, i32
  }
  func.func @transform_6(%arg0: i32) -> (i32, i32, i32) {
    %c0_i32 = arith.constant 0 : i32
    %c0_i32_0 = arith.constant 0 : i32
    %c0_i32_1 = arith.constant 0 : i32
    return %arg0, %c0_i32, %c0_i32_0 : i32, i32, i32
  }
}

</mosaic_0001>

<bundles_post_ra>
// kernel: tpu_custom_call.1
= control target key start
LH: loop header
LB: loop body
LE: loop exit
PB: predicated region body
PF: predicated region fallthrough
CT: control target
= control target key end

     0   :  { %12 = vsyncpa [#allocation4], 0  ;;  %s4237_s0 = inlined_call_operand.vmem [shape: bf16[2,256,4], index: 0, kind: input, shape index: {}]   ;;  %s4238_s1 = inlined_call_operand.vmem [shape: f32[1,4], index: 1, kind: input, shape index: {}]   ;;  %s4239_s2 = inlined_call_operand.vmem [shape: f32[1,4], index: 2, kind: input, shape index: {}]   ;;  %s4240_s3 = inlined_call_operand.vmem [shape: bf16[3,12,4], index: 3, kind: input, shape index: {}]   ;;  %s4241_s4 = inlined_call_operand.vmem [shape: f32[1,4], index: 4, kind: input, shape index: {}]   ;;  %s4242_s5 = inlined_call_operand.vmem [shape: bf16[2,256,4], index: 5, kind: output, shape index: {0}]   ;;  %s4243_s6 = inlined_call_operand.hbm [shape: f32[2,2,4], index: 6, kind: output, shape index: {1}]  }
   0x1   :  { %14 = vsyncpa [#allocation4 + $0x1], 0  ;;  %s3354_s21 = smov 0   ;;  %s3356_s22 = smov 0  }
   0x2   :  { %s3358_s23 = smov 0   ;;  %s3360_s24 = smov 0  }
   0x3 LB: > { %s3375_s25 = sadd.s32 4294967295, %s3313_s24   ;;  %s2767_s26 = sadd.s32 4294967294, %s3313_s24   ;;  %s3313_s24 = sphi %s3360_s24, %s4277_s24   ;;  %s3309_s23 = sphi %s3358_s23, %s4276_s23   ;;  %s3305_s22 = sphi %s3356_s22, %s4275_s22   ;;  %s3301_s21 = sphi %s3354_s21, %s4274_s21  }
   0x4   : > { %s3379_s27 = sadd.s32 1, %s3313_s24   ;;  %s163_s28 = sadd.s32 1, %s3309_s23 }
   0x5   : > { %s160_s29 = ssub.s32 %s3313_s24, %s3379_s27  ;;  %p173_p0 = scmp.ne.s32.totalorder %s3309_s23, %s3305_s22 }
   0x6   : > { %p161_p1 = scmp.eq.s32.totalorder %s160_s29, 0  ;;  %p174_p2 = scmp.eq.s32.totalorder %s3375_s25, 1 }
   0x7   : > { %p179_p3 = scmp.ne.s32.totalorder %s3305_s22, %s3301_s21  ;;  %p180_p4 = scmp.eq.s32.totalorder %s2767_s26, 1 }
   0x8   : > { %s3390_s30 = scalar_select %p161_p1, %s3309_s23, %s163_s28  }
   0x9   : > { %p3392_p5 = por %p174_p2, %p173_p0  ;;  %p3396_p6 = por %p180_p4, %p179_p3 }
   0xa   : > { %p2770_p7 = scmp.ge.s32.totalorder %s3313_s24, 1  ;;  %p218_p8 = scmp.lt.s32.totalorder %s3313_s24, 3 }
   0xc   : > { %p219_p9 = pnand %p2770_p7, %p218_p8 }
   0xd   : > { %p253_p10 = scmp.lt.s32.totalorder (!%p219_p9), %s3375_s25, 1  ;;  %v457_v0 = vlaneseq (!%p219_p9)  ;;  %v3412_v2 = vld [vmem:[%s4238_s1] ss:$0 sm:$0xff] (!%p219_p9)  ;;  %vm1310_vm4 = vsmask.f32 (!%p219_p9), 7424  ;;  %s3315_s18 = smov (!%p219_p9), 4  }
   0xe   : > { %222 = sbr.rel (%p219_p9) target bundleno = 528 (0x210), region = 40  ;;  %v3448_v22 = vld [vmem:[%s4239_s2] ss:$0 sm:$0xff] (!%p219_p9)  ;;  %s3316_s19 = smov (!%p219_p9), 8  }
   0xf   : > { %v3406_v1 = vshrl.u32 (!%p219_p9), %v457_v0, 7  ;;  %s3318_s12 = smov (!%p219_p9), [#allocation3]  }
  0x10   : > { %s3255_s13 = sshll.u32 (!%p219_p9), %s3318_s12, 4  ;;  %s3256_s13 = int_to_ptr.vmem [resolvable:$false] %s3255_s13 }
  0x11   : > { %v459_v3 = vadd.s32 (!%p219_p9), 8, %v3406_v1  ;;  %v460_v4 = vadd.s32 (!%p219_p9), 16, %v3406_v1  ;;  %v494_v5 = vand.u32 (!%p219_p9), 15, %v3406_v1  ;;  %v462_v6 = vadd.s32 (!%p219_p9), 32, %v3406_v1  ;;  %s3257_s14 = scalar_lea.vmem (!%p219_p9), %s3256_s13, 64 }
  0x12   : > { %v3426_v7 = vadd.s32 (!%p219_p9), 56, %v3406_v1  ;;  %v3429_v8 = vadd.s32 (!%p219_p9), 48, %v3406_v1  ;;  %v3432_v9 = vadd.s32 (!%p219_p9), 64, %v3406_v1  ;;  %v3435_v10 = vadd.s32 (!%p219_p9), 88, %v3406_v1 }
  0x13   : > { %v501_v12 = vand.u32 (!%p219_p9), 15, %v459_v3  ;;  %v508_v14 = vand.u32 (!%p219_p9), 15, %v460_v4  ;;  %vm3439_vm0 = vcmp.eq.s32.totalorder (!%p219_p9), %v494_v5, 0  ;;  %v522_v33 = vand.u32 (!%p219_p9), 15, %v462_v6 }
  0x15   : > { %s3404_s9 = scalar_select %p253_p10, %s3375_s25, 1  ;;  %vm3450_vm1 = vcmp.eq.s32.totalorder %v501_v12, 15  ;;  %vm3454_vm2 = vcmp.eq.s32.totalorder %v508_v14, 0  ;;  %vm3470_vm3 = vcmp.eq.s32.totalorder %v522_v33, 0 }
  0x17   : > { %s2870_s10 = sshll.u32 %s3404_s9, 7  ;;  %s250_s9 = sand.u32 1, %s3305_s22  }
  0x18   : > { %s3423_s15 = scalar_lea.vmem %s4237_s0, %s2870_s10  ;;  %s3996_s17 = scalar_lea.vmem %s4242_s5, %s2870_s10 }
  0x19   : > { %v2905_v11 = vld [vmem:[%s3423_s15] sm:$0xff]   ;;  %v2968_v13 = vld [vmem:[%s3423_s15 + $0x8] sm:$0xff]   ;;  %v2969_v16 = vld [vmem:[%s3423_s15 + $0x10] sm:$0xff]   ;;  %s2771_s10 = sshll.u32 %s250_s9, 1  ;;  %s2667_s11 = scalar_lea.sflag [#allocation4], %s250_s9 }
  0x1a   : > { %v2906_v17 = vunpack.c.l.bf16 %v2905_v11  ;;  %v2907_v18 = vunpack.c.h.bf16 %v2905_v11  ;;  %v2910_v19 = vunpack.c.l.bf16 %v2968_v13  ;;  %v2911_v20 = vunpack.c.h.bf16 %v2968_v13  ;;  %v2970_v21 = vld [vmem:[%s3423_s15 + $0x18] sm:$0xff]   ;;  %v2971_v5 = vld [vmem:[%s3423_s15 + $0x20] sm:$0xff]  }
  0x1b   : > { %v2914_v25 = vunpack.c.l.bf16 %v2969_v16  ;;  %v2915_v26 = vunpack.c.h.bf16 %v2969_v16  ;;  %v2918_v34 = vunpack.c.l.bf16 %v2970_v21  ;;  %v2919_v42 = vunpack.c.h.bf16 %v2970_v21 }
  0x1c   : > { %v338_v27 = vmul.f32 %v2906_v17, %v3412_v2  ;;  %v339_v28 = vmul.f32 %v2907_v18, %v3412_v2  ;;  %v340_v29 = vmul.f32 %v2910_v19, %v3412_v2  ;;  %v341_v30 = vmul.f32 %v2911_v20, %v3412_v2 }
  0x1d   : > { %v342_v31 = vmul.f32 %v2914_v25, %v3412_v2  ;;  %v343_v32 = vmul.f32 %v2915_v26, %v3412_v2  ;;  %v344_v49 = vmul.f32 %v2918_v34, %v3412_v2  ;;  %v345_v50 = vmul.f32 %v2919_v42, %v3412_v2 }
  0x1e   : > { %v377_v35 = vadd.f32 %v3448_v22, %v338_v27  ;;  %v378_v36 = vadd.f32 %v3448_v22, %v339_v28  ;;  %v379_v37 = vadd.f32 %v3448_v22, %v340_v29  ;;  %v380_v38 = vadd.f32 %v3448_v22, %v341_v30 }
  0x1f   : > { %v381_v39 = vadd.f32 %v3448_v22, %v342_v31  ;;  %v382_v40 = vadd.f32 %v3448_v22, %v343_v32  ;;  %v383_v61 = vadd.f32 %v3448_v22, %v344_v49  ;;  %v384_v62 = vadd.f32 %v3448_v22, %v345_v50 }
  0x20   : > { %v409_v43 = vmax.f32 %v377_v35, 0.0  ;;  %v410_v44 = vmax.f32 %v378_v36, 0.0  ;;  %v3474_v45 = vmax.f32 %v379_v37, 0.0  ;;  %v3476_v46 = vmax.f32 %v380_v38, 0.0 }
  0x21   : > { %v3478_v47 = vmax.f32 %v381_v39, 0.0  ;;  %v3480_v48 = vmax.f32 %v382_v40, 0.0  ;;  %v3506_v11 = vmax.f32 %v383_v61, 0.0  ;;  %v416_v12 = vmax.f32 %v384_v62, 0.0 }
  0x22   : > { %v441_v51 = vpack.c.bf16 %v410_v44, %v409_v43  ;;  %v971_v52 = vsel %vm3450_vm1, 0.0, %v410_v44  ;;  %v1262_v53 = vsel %vm3439_vm0, 0.0, %v409_v43  ;;  %v1264_v54 = vsel %vm3454_vm2, 0.0, %v3474_v45 }
  0x23   : > { %v3491_v55 = vpack.c.bf16 %v971_v52, %v409_v43  ;;  %v1294_v56 = vpack.c.bf16 %v410_v44, %v1262_v53  ;;  %v1295_v57 = vpack.c.bf16 %v3476_v46, %v1264_v54  ;;  %v442_v58 = vpack.c.bf16 %v3476_v46, %v3474_v45  ;;  %v2973_v44 = vld [vmem:[%s3423_s15 + $0x30] sm:$0xff]  }
  0x24   : > { %1476 = vrot.lane.b32.xlu0 %v441_v51, %s3315_s18  ;;  %v1266_v59 = vsel %vm3470_vm3, 0.0, %v3478_v47  ;;  %v443_v60 = vpack.c.bf16 %v3480_v48, %v3478_v47  ;;  %v543_v13 = vand.u32 15, %v3426_v7  ;;  %v536_v17 = vand.u32 15, %v3429_v8  ;;  %v2972_v8 = vld [vmem:[%s3423_s15 + $0x28] sm:$0xff]  }
  0x25   : > { %v1312_v63 = vshrl.u32 %v1294_v56, 16  ;;  %v1314_v0 = vshll.u32 %v1294_v56, 16  ;;  %v1319_v3 = vshll.u32 %v1295_v57, 16  ;;  %v1296_v4 = vpack.c.bf16 %v3480_v48, %v1266_v59 }
  0x26   : > { %v1323_v6 = vshrl.u32 %v1295_v57, 16  ;;  %v444_v18 = vpack.c.bf16 %v416_v12, %v3506_v11  ;;  %vm881_vm5 = vcmp.eq.s32.totalorder %v543_v13, 15  ;;  %v2922_v20 = vunpack.c.l.bf16 %v2971_v5  ;;  %v2974_v13 = vld [vmem:[%s3423_s15 + $0x38] sm:$0xff]  }
  0x27   : > { %v3509_v14 = vrot.slane %v1314_v0, 1  ;;  %v1321_v15 = vrot.slane %v1319_v3, 1  ;;  %v1327_v16 = vshll.u32 %v1296_v4, 16  ;;  %v1331_v19 = vshrl.u32 %v1296_v4, 16 }
  0x28   : > { %1478 = vrot.lane.b32.xlu0 %v442_v58, %s3315_s18  ;;  %v977_v25 = vsel %vm881_vm5, 0.0, %v416_v12  ;;  %vm1172_vm6 = vcmp.eq.s32.totalorder %v536_v17, 0  ;;  %v2923_v26 = vunpack.c.h.bf16 %v2971_v5  ;;  %v346_v27 = vmul.f32 %v2922_v20, %v3412_v2 }
  0x29   : > { %v1317_v21 = vor.u32 %v3509_v14, %v1312_v63  ;;  %v1325_v23 = vor.u32 %v1323_v6, %v1321_v15  ;;  %v1329_v24 = vrot.slane %v1327_v16, 1  ;;  %v3516_v7 = vpack.c.bf16 %v977_v25, %v3506_v11 }
  0x2a   : > { %v1268_v30 = vsel %vm1172_vm6, 0.0, %v3506_v11  ;;  %v347_v33 = vmul.f32 %v2923_v26, %v3412_v2  ;;  %v385_v34 = vadd.f32 %v3448_v22, %v346_v27  ;;  %v550_v35 = vand.u32 15, %v3432_v9 }
  0x2b   : > { %v1322_v28 = vsel %vm1310_vm4, %v1317_v21, %v1321_v15  ;;  %v1330_v29 = vsel %vm1310_vm4, %v1325_v23, %v1329_v24  ;;  %v1333_v31 = vor.u32 %v1331_v19, %v1329_v24  ;;  %v1297_v32 = vpack.c.bf16 %v416_v12, %v1268_v30 }
  0x2c   : > { %1542 = vrot.lane.b32.xlu1 %v1322_v28, %s3316_s19  ;;  %1480 = vrot.lane.b32.xlu0 %v443_v60, %s3315_s18  ;;  %v2926_v36 = vunpack.c.l.bf16 %v2972_v8  ;;  %v2927_v37 = vunpack.c.h.bf16 %v2972_v8  ;;  %v571_v38 = vand.u32 15, %v3435_v10  ;;  %v468_v39 = vadd.s32 80, %v3406_v1 }
  0x2d   : > { %v1335_v40 = vshll.u32 %v1297_v32, 16  ;;  %v386_v41 = vadd.f32 %v3448_v22, %v347_v33  ;;  %v3531_v42 = vmax.f32 %v385_v34, 0.0  ;;  %vm3533_vm7 = vcmp.eq.s32.totalorder %v550_v35, 0  ;;  %v2975_v34 = vld [vmem:[%s3423_s15 + $0x40] sm:$0xff]  }
  0x2e   : > { %v1339_v49 = vshrl.u32 %v1297_v32, 16  ;;  %v348_v50 = vmul.f32 %v2926_v36, %v3412_v2  ;;  %v349_v9 = vmul.f32 %v2927_v37, %v3412_v2  ;;  %vm3540_vm8 = vcmp.eq.s32.totalorder %v571_v38, 15 }
  0x2f   : > { %v1337_v10 = vrot.slane %v1335_v40, 1  ;;  %v3545_v52 = vmax.f32 %v386_v41, 0.0  ;;  %v1270_v53 = vsel %vm3533_vm7, 0.0, %v3531_v42  ;;  %v564_v54 = vand.u32 15, %v468_v39 }
  0x30   : > { %1544 = vrot.lane.b32.xlu1 %v1330_v29, %s3316_s19  ;;  %v387_v56 = vadd.f32 %v3448_v22, %v348_v50  ;;  %v388_v57 = vadd.f32 %v3448_v22, %v349_v9  ;;  %v2930_v58 = vunpack.c.l.bf16 %v2973_v44  ;;  %v2931_v59 = vunpack.c.h.bf16 %v2973_v44 }
  0x31   : > { %v1338_v60 = vsel %vm1310_vm4, %v1333_v31, %v1337_v10  ;;  %v1298_v61 = vpack.c.bf16 %v3545_v52, %v1270_v53  ;;  %v1341_v62 = vor.u32 %v1339_v49, %v1337_v10  ;;  %v445_v63 = vpack.c.bf16 %v3545_v52, %v3531_v42 }
  0x32   : > { %1546 = vrot.lane.b32.xlu0 %v1338_v60, %s3316_s19  ;;  %v419_v0 = vmax.f32 %v387_v56, 0.0  ;;  %v420_v3 = vmax.f32 %v388_v57, 0.0  ;;  %vm1176_vm9 = vcmp.eq.s32.totalorder %v564_v54, 0  ;;  %v350_v4 = vmul.f32 %v2930_v58, %v3412_v2 }
  0x33   : > { %v1343_v5 = vshll.u32 %v1298_v61, 16  ;;  %v1347_v6 = vshrl.u32 %v1298_v61, 16  ;;  %v351_v11 = vmul.f32 %v2931_v59, %v3412_v2  ;;  %v470_v12 = vadd.s32 96, %v3406_v1  ;;  %v2976_v61 = vld [vmem:[%s3423_s15 + $0x48] sm:$0xff]  }
  0x34   : > { %1482 = vrot.lane.b32.xlu1 %v444_v18, %s3315_s18  ;;  %v446_v15 = vpack.c.bf16 %v420_v3, %v419_v0  ;;  %v981_v16 = vsel %vm3540_vm8, 0.0, %v420_v3  ;;  %v1272_v17 = vsel %vm1176_vm9, 0.0, %v419_v0  ;;  %v389_v19 = vadd.f32 %v3448_v22, %v350_v4 }
  0x35   : > { %v1345_v20 = vrot.slane %v1343_v5, 1  ;;  %v3565_v21 = vpack.c.bf16 %v981_v16, %v419_v0  ;;  %v1299_v23 = vpack.c.bf16 %v420_v3, %v1272_v17  ;;  %v390_v18 = vadd.f32 %v3448_v22, %v351_v11  ;;  %v2977_v17 = vld [vmem:[%s3423_s15 + $0x50] sm:$0xff]  }
  0x36   : > { %1484 = vrot.lane.b32.xlu0 %v445_v63, %s3315_s18  ;;  %v3569_v24 = vmax.f32 %v389_v19, 0.0  ;;  %v578_v25 = vand.u32 15, %v470_v12  ;;  %v2934_v26 = vunpack.c.l.bf16 %v2974_v13  ;;  %v2935_v27 = vunpack.c.h.bf16 %v2974_v13 }
  0x37   : > { %v1346_v8 = vsel %vm1310_vm4, %v1341_v62, %v1345_v20  ;;  %v1349_v28 = vor.u32 %v1347_v6, %v1345_v20  ;;  %v1351_v29 = vshll.u32 %v1299_v23, 16  ;;  %v3572_v30 = vmax.f32 %v390_v18, 0.0 }
  0x38   : > { %1548 = vrot.lane.b32.xlu1 %v1346_v8, %s3316_s19  ;;  %vm1178_vm10 = vcmp.eq.s32.totalorder %v578_v25, 0  ;;  %v1355_v31 = vshrl.u32 %v1299_v23, 16  ;;  %v352_v32 = vmul.f32 %v2934_v26, %v3412_v2  ;;  %v353_v33 = vmul.f32 %v2935_v27, %v3412_v2 }
  0x39   : > { %v1353_v35 = vrot.slane %v1351_v29, 1  ;;  %v1274_v36 = vsel %vm1178_vm10, 0.0, %v3569_v24  ;;  %v447_v37 = vpack.c.bf16 %v3572_v30, %v3569_v24  ;;  %v473_v38 = vadd.s32 120, %v3406_v1 }
  0x3a   : > { %v1300_v39 = vpack.c.bf16 %v3572_v30, %v1274_v36  ;;  %v391_v40 = vadd.f32 %v3448_v22, %v352_v32  ;;  %v392_v41 = vadd.f32 %v3448_v22, %v353_v33  ;;  %v472_v43 = vadd.s32 112, %v3406_v1 }
  0x3b   : > { %v1354_v44 = vsel %vm1310_vm4, %v1349_v28, %v1353_v35  ;;  %v1357_v49 = vor.u32 %v1355_v31, %v1353_v35  ;;  %v599_v50 = vand.u32 15, %v473_v38  ;;  %v2938_v9 = vunpack.c.l.bf16 %v2975_v34 }
  0x3c   : > { %1486 = vrot.lane.b32.xlu1 %v446_v15, %s3315_s18  ;;  %1550 = vrot.lane.b32.xlu0 %v1354_v44, %s3316_s19  ;;  %v1359_v51 = vshll.u32 %v1300_v39, 16  ;;  %v423_v10 = vmax.f32 %v391_v40, 0.0  ;;  %v424_v53 = vmax.f32 %v392_v41, 0.0  ;;  %v592_v54 = vand.u32 15, %v472_v43 }
  0x3d   : > { %v1363_v56 = vshrl.u32 %v1300_v39, 16  ;;  %v2939_v57 = vunpack.c.h.bf16 %v2975_v34  ;;  %v354_v58 = vmul.f32 %v2938_v9, %v3412_v2  ;;  %vm3590_vm11 = vcmp.eq.s32.totalorder %v599_v50, 15 }
  0x3e   : > { %v1361_v59 = vrot.slane %v1359_v51, 1  ;;  %vm1180_vm12 = vcmp.eq.s32.totalorder %v592_v54, 0  ;;  %v448_v62 = vpack.c.bf16 %v424_v53, %v423_v10  ;;  %v474_v11 = vadd.s32 128, %v3406_v1 }
  0x3f   : > { %v1276_v63 = vsel %vm1180_vm12, 0.0, %v423_v10  ;;  %v355_v0 = vmul.f32 %v2939_v57, %v3412_v2  ;;  %v393_v3 = vadd.f32 %v3448_v22, %v354_v58  ;;  %v2942_v15 = vunpack.c.l.bf16 %v2976_v61 }
  0x40   : > { %v1362_v4 = vsel %vm1310_vm4, %v1357_v49, %v1361_v59  ;;  %1488 = vrot.lane.b32.xlu0 %v447_v37, %s3315_s18  ;;  %v1301_v5 = vpack.c.bf16 %v424_v53, %v1276_v63  ;;  %v1365_v6 = vor.u32 %v1363_v56, %v1361_v59  ;;  %v2943_v16 = vunpack.c.h.bf16 %v2976_v61 }
  0x41   : > { %1552 = vrot.lane.b32.xlu1 %v1362_v4, %s3316_s19  ;;  %v394_v12 = vadd.f32 %v3448_v22, %v355_v0  ;;  %v3602_v13 = vmax.f32 %v393_v3, 0.0  ;;  %v606_v20 = vand.u32 15, %v474_v11  ;;  %v477_v18 = vadd.s32 152, %v3406_v1 }
  0x42   : > { %v1367_v19 = vshll.u32 %v1301_v5, 16  ;;  %v1371_v23 = vshrl.u32 %v1301_v5, 16  ;;  %v356_v26 = vmul.f32 %v2942_v15, %v3412_v2  ;;  %v357_v27 = vmul.f32 %v2943_v16, %v3412_v2  ;;  %v2979_v16 = vld [vmem:[%s3423_s15 + $0x60] sm:$0xff]  }
  0x43   : > { %v3606_v25 = vmax.f32 %v394_v12, 0.0  ;;  %v476_v8 = vadd.s32 144, %v3406_v1  ;;  %v985_v28 = vsel %vm3590_vm11, 0.0, %v424_v53  ;;  %vm1182_vm13 = vcmp.eq.s32.totalorder %v606_v20, 0  ;;  %v2978_v53 = vld [vmem:[%s3423_s15 + $0x58] sm:$0xff]  }
  0x44   : > { %v1369_v29 = vrot.slane %v1367_v19, 1  ;;  %v2946_v31 = vunpack.c.l.bf16 %v2977_v17  ;;  %v1278_v32 = vsel %vm1182_vm13, 0.0, %v3602_v13  ;;  %v395_v33 = vadd.f32 %v3448_v22, %v356_v26 }
  0x45   : > { %1490 = vrot.lane.b32.xlu1 %v448_v62, %s3315_s18  ;;  %v396_v34 = vadd.f32 %v3448_v22, %v357_v27  ;;  %v627_v35 = vand.u32 15, %v477_v18  ;;  %v1302_v37 = vpack.c.bf16 %v3606_v25, %v1278_v32  ;;  %v449_v39 = vpack.c.bf16 %v3606_v25, %v3602_v13 }
  0x46   : > { %v1370_v36 = vsel %vm1310_vm4, %v1365_v6, %v1369_v29  ;;  %v1373_v38 = vor.u32 %v1371_v23, %v1369_v29  ;;  %v427_v40 = vmax.f32 %v395_v33, 0.0  ;;  %v620_v43 = vand.u32 15, %v476_v8 }
  0x47   : > { %1554 = vrot.lane.b32.xlu0 %v1370_v36, %s3316_s19  ;;  %v428_v41 = vmax.f32 %v396_v34, 0.0  ;;  %v2947_v44 = vunpack.c.h.bf16 %v2977_v17  ;;  %v1375_v49 = vshll.u32 %v1302_v37, 16  ;;  %v1379_v50 = vshrl.u32 %v1302_v37, 16 }
  0x48   : > { %v358_v9 = vmul.f32 %v2946_v31, %v3412_v2  ;;  %v478_v51 = vadd.s32 160, %v3406_v1  ;;  %v3625_v54 = vpack.c.bf16 %v985_v28, %v423_v10  ;;  %vm3627_vm14 = vcmp.eq.s32.totalorder %v627_v35, 15 }
  0x49   : > { %vm1184_vm15 = vcmp.eq.s32.totalorder %v620_v43, 0  ;;  %v359_v57 = vmul.f32 %v2947_v44, %v3412_v2  ;;  %v1377_v58 = vrot.slane %v1375_v49, 1  ;;  %v450_v59 = vpack.c.bf16 %v428_v41, %v427_v40 }
  0x4a   : > { %v1280_v60 = vsel %vm1184_vm15, 0.0, %v427_v40  ;;  %v397_v61 = vadd.f32 %v3448_v22, %v358_v9  ;;  %v634_v10 = vand.u32 15, %v478_v51  ;;  %v2950_v0 = vunpack.c.l.bf16 %v2978_v53 }
  0x4b   : > { %1492 = vrot.lane.b32.xlu0 %v449_v39, %s3315_s18  ;;  %v1303_v62 = vpack.c.bf16 %v428_v41, %v1280_v60  ;;  %v398_v63 = vadd.f32 %v3448_v22, %v359_v57  ;;  %v1378_v3 = vsel %vm1310_vm4, %v1373_v38, %v1377_v58  ;;  %v1381_v4 = vor.u32 %v1379_v50, %v1377_v58  ;;  %v2980_v50 = vld [vmem:[%s3423_s15 + $0x68] sm:$0xff]  }
  0x4c   : > { %v3636_v5 = vmax.f32 %v397_v61, 0.0  ;;  %v2951_v6 = vunpack.c.h.bf16 %v2978_v53  ;;  %1556 = vrot.lane.b32.xlu1 %v1378_v3, %s3316_s19  ;;  %vm1186_vm0 = vcmp.eq.s32.totalorder %v634_v10, 0  ;;  %v360_v19 = vmul.f32 %v2950_v0, %v3412_v2 }
  0x4d   : > { %v1383_v11 = vshll.u32 %v1303_v62, 16  ;;  %v3639_v12 = vmax.f32 %v398_v63, 0.0  ;;  %v1387_v15 = vshrl.u32 %v1303_v62, 16  ;;  %v481_v23 = vadd.s32 184, %v3406_v1 }
  0x4e   : > { %v1282_v17 = vsel %vm1186_vm0, 0.0, %v3636_v5  ;;  %v361_v20 = vmul.f32 %v2951_v6, %v3412_v2  ;;  %v989_v18 = vsel %vm3627_vm14, 0.0, %v428_v41  ;;  %v480_v8 = vadd.s32 176, %v3406_v1  ;;  %v2981_v6 = vld [vmem:[%s3423_s15 + $0x70] sm:$0xff]  }
  0x4f   : > { %v1385_v26 = vrot.slane %v1383_v11, 1  ;;  %v1304_v27 = vpack.c.bf16 %v3639_v12, %v1282_v17  ;;  %v399_v28 = vadd.f32 %v3448_v22, %v360_v19  ;;  %v655_v31 = vand.u32 15, %v481_v23 }
  0x50   : > { %v400_v29 = vadd.f32 %v3448_v22, %v361_v20  ;;  %v2954_v32 = vunpack.c.l.bf16 %v2979_v16  ;;  %1494 = vrot.lane.b32.xlu1 %v450_v59, %s3315_s18  ;;  %v648_v36 = vand.u32 15, %v480_v8  ;;  %v451_v37 = vpack.c.bf16 %v3639_v12, %v3636_v5 }
  0x51   : > { %v1386_v33 = vsel %vm1310_vm4, %v1381_v4, %v1385_v26  ;;  %v1389_v34 = vor.u32 %v1387_v15, %v1385_v26  ;;  %v1391_v35 = vshll.u32 %v1304_v27, 16  ;;  %v431_v38 = vmax.f32 %v399_v28, 0.0 }
  0x52   : > { %1558 = vrot.lane.b32.xlu0 %v1386_v33, %s3316_s19  ;;  %v432_v39 = vmax.f32 %v400_v29, 0.0  ;;  %v1395_v41 = vshrl.u32 %v1304_v27, 16  ;;  %vm1188_vm1 = vcmp.eq.s32.totalorder %v648_v36, 0  ;;  %v2955_v44 = vunpack.c.h.bf16 %v2979_v16 }
  0x53   : > { %v1393_v43 = vrot.slane %v1391_v35, 1  ;;  %v362_v49 = vmul.f32 %v2954_v32, %v3412_v2  ;;  %v3659_v9 = vpack.c.bf16 %v989_v18, %v427_v40  ;;  %vm3661_vm2 = vcmp.eq.s32.totalorder %v655_v31, 15 }
  0x54   : > { %v1284_v53 = vsel %vm1188_vm1, 0.0, %v431_v38  ;;  %v482_v56 = vadd.s32 192, %v3406_v1  ;;  %v452_v58 = vpack.c.bf16 %v432_v39, %v431_v38  ;;  %v363_v40 = vmul.f32 %v2955_v44, %v3412_v2 }
  0x55   : > { %v1394_v57 = vsel %vm1310_vm4, %v1389_v34, %v1393_v43  ;;  %v1305_v59 = vpack.c.bf16 %v432_v39, %v1284_v53  ;;  %v1397_v60 = vor.u32 %v1395_v41, %v1393_v43  ;;  %v401_v61 = vadd.f32 %v3448_v22, %v362_v49  ;;  %v2982_v34 = vld [vmem:[%s3423_s15 + $0x78] sm:$0xff]  }
  0x56   : > { %1560 = vrot.lane.b32.xlu1 %v1394_v57, %s3316_s19  ;;  %1496 = vrot.lane.b32.xlu0 %v451_v37, %s3315_s18  ;;  %v662_v62 = vand.u32 15, %v482_v56  ;;  %v2958_v63 = vunpack.c.l.bf16 %v2980_v50  ;;  %v2959_v3 = vunpack.c.h.bf16 %v2980_v50  ;;  %v485_v4 = vadd.s32 216, %v3406_v1 }
  0x57   : > { %v1399_v10 = vshll.u32 %v1305_v59, 16  ;;  %v1403_v0 = vshrl.u32 %v1305_v59, 16  ;;  %v402_v11 = vadd.f32 %v3448_v22, %v363_v40  ;;  %v3674_v15 = vmax.f32 %v401_v61, 0.0 }
  0x58   : > { %vm3676_vm3 = vcmp.eq.s32.totalorder %v662_v62, 0  ;;  %v364_v17 = vmul.f32 %v2958_v63, %v3412_v2  ;;  %v993_v19 = vsel %vm3661_vm2, 0.0, %v432_v39  ;;  %v365_v23 = vmul.f32 %v2959_v3, %v3412_v2 }
  0x59   : > { %v1401_v20 = vrot.slane %v1399_v10, 1  ;;  %v484_v18 = vadd.s32 208, %v3406_v1  ;;  %v3686_v26 = vmax.f32 %v402_v11, 0.0  ;;  %v1286_v27 = vsel %vm3676_vm3, 0.0, %v3674_v15 }
  0x5a   : > { %1498 = vrot.lane.b32.xlu1 %v452_v58, %s3315_s18  ;;  %v403_v8 = vadd.f32 %v3448_v22, %v364_v17  ;;  %v2962_v28 = vunpack.c.l.bf16 %v2981_v6  ;;  %v404_v32 = vadd.f32 %v3448_v22, %v365_v23  ;;  %v683_v33 = vand.u32 15, %v485_v4 }
  0x5b   : > { %v1402_v29 = vsel %vm1310_vm4, %v1397_v60, %v1401_v20  ;;  %v1405_v31 = vor.u32 %v1403_v0, %v1401_v20  ;;  %v1306_v35 = vpack.c.bf16 %v3686_v26, %v1286_v27  ;;  %v453_v36 = vpack.c.bf16 %v3686_v26, %v3674_v15 }
  0x5c   : > { %1562 = vrot.lane.b32.xlu0 %v1402_v29, %s3316_s19  ;;  %v3699_v37 = vmax.f32 %v403_v8, 0.0  ;;  %v676_v39 = vand.u32 15, %v484_v18  ;;  %v3701_v41 = vmax.f32 %v404_v32, 0.0  ;;  %v2963_v43 = vunpack.c.h.bf16 %v2981_v6 }
  0x5d   : > { %v366_v44 = vmul.f32 %v2962_v28, %v3412_v2  ;;  %v486_v49 = vadd.s32 224, %v3406_v1  ;;  %v1407_v50 = vshll.u32 %v1306_v35, 16  ;;  %v1411_v51 = vshrl.u32 %v1306_v35, 16 }
  0x5e   : > { %vm1192_vm5 = vcmp.eq.s32.totalorder %v676_v39, 0  ;;  %v2966_v53 = vunpack.c.l.bf16 %v2982_v34  ;;  %v3705_v56 = vpack.c.bf16 %v993_v19, %v431_v38  ;;  %vm3707_vm6 = vcmp.eq.s32.totalorder %v683_v33, 15 }
  0x5f   : > { %v1288_v58 = vsel %vm1192_vm5, 0.0, %v3699_v37  ;;  %v367_v59 = vmul.f32 %v2963_v43, %v3412_v2  ;;  %v1409_v60 = vrot.slane %v1407_v50, 1  ;;  %v454_v40 = vpack.c.bf16 %v3701_v41, %v3699_v37 }
  0x60   : > { %1500 = vrot.lane.b32.xlu0 %v453_v36, %s3315_s18  ;;  %v1307_v61 = vpack.c.bf16 %v3701_v41, %v1288_v58  ;;  %v405_v62 = vadd.f32 %v3448_v22, %v366_v44  ;;  %v690_v63 = vand.u32 15, %v486_v49  ;;  %v2967_v10 = vunpack.c.h.bf16 %v2982_v34  ;;  %v3248_v58 = vld [vmem:[%s4240_s3] sm:$0x3f]  }
  0x61   : > { %v406_v38 = vadd.f32 %v3448_v22, %v367_v59  ;;  %v368_v0 = vmul.f32 %v2966_v53, %v3412_v2  ;;  %v1410_v3 = vsel %vm1310_vm4, %v1405_v31, %v1409_v60  ;;  %v1413_v4 = vor.u32 %v1411_v51, %v1409_v60 }
  0x62   : > { %v1415_v6 = vshll.u32 %v1307_v61, 16  ;;  %v3721_v11 = vmax.f32 %v405_v62, 0.0  ;;  %1564 = vrot.lane.b32.xlu1 %v1410_v3, %s3316_s19  ;;  %vm1194_vm7 = vcmp.eq.s32.totalorder %v690_v63, 0  ;;  %v1419_v17 = vshrl.u32 %v1307_v61, 16  ;;  %v3249_v62 = vld [vmem:[%s4240_s3 + $0x8] sm:$0x3f]  }
  0x63   : > { %v3724_v16 = vmax.f32 %v406_v38, 0.0  ;;  %v369_v19 = vmul.f32 %v2967_v10, %v3412_v2  ;;  %vm1023_vm8 = vsmask.f32 256  ;;  %vm1163_vm9 = vcmask 1040384  }
  0x64   : > { %v1417_v20 = vrot.slane %v1415_v6, 1  ;;  %v1290_v23 = vsel %vm1194_vm7, 0.0, %v3721_v11  ;;  %v407_v18 = vadd.f32 %v3448_v22, %v368_v0  ;;  %v488_v27 = vadd.s32 240, %v3406_v1  ;;  %vm3767_vm0 = vmand %vm1163_vm9, %vm1023_vm8 }
  0x65   : > { %vm1440_vm10 = vcmask 1047552   ;;  %v1308_v8 = vpack.c.bf16 %v3724_v16, %v1290_v23  ;;  %v455_v28 = vpack.c.bf16 %v3724_v16, %v3721_v11  ;;  %v408_v29 = vadd.f32 %v3448_v22, %v369_v19 }
  0x66   : > { %v489_v31 = vadd.s32 248, %v3406_v1  ;;  %v1418_v2 = vsel %vm1310_vm4, %v1413_v4, %v1417_v20  ;;  %v1421_v32 = vor.u32 %v1419_v17, %v1417_v20  ;;  %v439_v33 = vmax.f32 %v407_v18, 0.0  ;;  %1502 = vrot.lane.b32.xlu1 %v454_v40, %s3315_s18  ;;  %v3762_v17 = vld [vmem:[%s4240_s3 + $0x10] sm:$0x3f]   ;;  %vm3782_vm2 = vmand %vm1440_vm10, %vm1310_vm4 }
  0x67   : > { %v704_v34 = vand.u32 15, %v488_v27  ;;  %1566 = vrot.lane.b32.xlu0 %v1418_v2, %s3316_s19  ;;  %v1423_v35 = vshll.u32 %v1308_v8, 16  ;;  %v440_v36 = vmax.f32 %v408_v29, 0.0  ;;  %v1427_v39 = vshrl.u32 %v1308_v8, 16 }
  0x68   : > { %v711_v43 = vand.u32 15, %v489_v31  ;;  %vm1443_vm11 = vcmask 31744   ;;  %v997_v22 = vsel %vm3707_vm6, 0.0, %v3701_v41  ;;  %v1025_v44 = vshrl.u32 %v3491_v55, 16 }
  0x69   : > { %vm1196_vm12 = vcmp.eq.s32.totalorder %v704_v34, 0  ;;  %v1028_v49 = vshll.u32 %v3491_v55, 16  ;;  %v1425_v50 = vrot.slane %v1423_v35, 1  ;;  %v456_v51 = vpack.c.bf16 %v440_v36, %v439_v33 }
  0x6a   : > { %v1292_v53 = vsel %vm1196_vm12, 0.0, %v439_v33  ;;  %vm905_vm13 = vcmp.eq.s32.totalorder %v711_v43, 15  ;;  %v3746_v40 = vrot.slane %v1025_v44, 7  ;;  %v461_v61 = vadd.s32 24, %v3406_v1 }
  0x6b   : > { %v1309_v59 = vpack.c.bf16 %v440_v36, %v1292_v53  ;;  %v1001_v60 = vsel %vm905_vm13, 0.0, %v440_v36  ;;  %v1426_v55 = vsel %vm1310_vm4, %v1421_v32, %v1425_v50  ;;  %1504 = vrot.lane.b32.xlu0 %v455_v28, %s3315_s18  ;;  %v1429_v38 = vor.u32 %v1427_v39, %v1425_v50 }
  0x6c   : > { %v3754_v63 = vpack.c.bf16 %v1001_v60, %v439_v33  ;;  %v463_v10 = vadd.s32 40, %v3406_v1  ;;  %1568 = vrot.lane.b32.xlu1 %v1426_v55, %s3316_s19  ;;  %v1030_v4 = vor.u32 %v1028_v49, %v3746_v40  ;;  %v515_v6 = vand.u32 15, %v461_v61 }
  0x6d   : > { %v1431_v0 = vshll.u32 %v1309_v59, 16  ;;  %v1435_v3 = vshrl.u32 %v1309_v59, 16  ;;  %vm1682_vm14 = vcmask 1045504   ;;  %vm264_vm15 = vcmask 97280  }
  0x6e   : > { %v1019_v19 = vshrl.u32 %v3754_v63, 16  ;;  %v529_v20 = vand.u32 15, %v463_v10  ;;  %vm3771_vm1 = vcmp.eq.s32.totalorder %v515_v6, 15  ;;  %3203 = vmatprep.subr.msk.bf16.mxu0 %vm1682_vm14, %v3248_v58  ;;  %v3777_v8 = vsel %vm1682_vm14, %v3248_v58, 0  ;;  %3202 = vmatprep.subr.msk.bf16.mxu1 %vm1682_vm14, %v3249_v62 }
  0x6f   : > { %v1433_v23 = vrot.slane %v1431_v0, 1  ;;  %v973_v31 = vsel %vm3771_vm1, 0.0, %v3476_v46  ;;  %3069 = vmatpush3.bf16.msra.mxu0 %v3777_v8  ;;  %v3317_v2 = vmov 0   ;;  %v1048_v32 = vshrl.u32 %v3516_v7, 16 }
  0x70   : > { %v3786_v29 = vrot.slane %v1019_v19, 7  ;;  %vm879_vm3 = vcmp.eq.s32.totalorder %v529_v20, 15  ;;  %265 = vst.msk [vmem:[#allocation2] sm:$0xff] %vm264_vm15, %v3317_v2  ;;  %266 = vst.msk [vmem:[#allocation2 + $0x88] sm:$0xff] %vm264_vm15, %v3317_v2  ;;  %1506 = vrot.lane.b32.xlu1 %v456_v51, %s3315_s18  ;;  %v1003_v35 = vpack.c.bf16 %v973_v31, %v3474_v45  ;;  %3205 = vmatprep.subr.msk.bf16.mxu0 %vm1682_vm14, %v3762_v17  ;;  %v1051_v44 = vshll.u32 %v3516_v7, 16  ;;  %s2867_s18 = sshll.u32 %s3375_s25, 5 }
  0x71   : > { %v1434_v33 = vsel %vm1310_vm4, %v1429_v38, %v1433_v23  ;;  %v1437_v34 = vor.u32 %v1435_v3, %v1433_v23  ;;  %v975_v36 = vsel %vm879_vm3, 0.0, %v3480_v48  ;;  %v3806_v43 = vrot.slane %v1048_v32, 7  ;;  %s4194_s29 = scalar_lea.hbm %s4243_s6, %s2867_s18 }
  0x72   : > { %1570 = vrot.lane.b32.xlu0 %v1434_v33, %s3316_s19  ;;  %v1165_v46 = vsel %vm3767_vm0, %v3786_v29, %v1030_v4  ;;  %v1004_v39 = vpack.c.bf16 %v975_v36, %v3478_v47  ;;  %v1032_v48 = vshrl.u32 %v1003_v35, 16  ;;  %v1035_v49 = vshll.u32 %v1003_v35, 16 }
  0x73   : > { %v1442_v45 = vsel %vm3782_vm2, %v1437_v34, %v3509_v14  ;;  %1444 = vst.msk [vmem:[#allocation2 + $0x8] sm:$0xff] %vm1443_vm11, %v1165_v46  ;;  %v1684_v50 = vsel %vm1682_vm14, %v3249_v62, 0  ;;  %v1053_v59 = vor.u32 %v1051_v44, %v3806_v43  ;;  %v467_v47 = vadd.s32 72, %v3406_v1 }
  0x74   : > { %v1040_v51 = vshrl.u32 %v1004_v39, 16  ;;  %v1043_v53 = vshll.u32 %v1004_v39, 16  ;;  %3035 = vmatpush3.bf16.msra.mxu1 %v1684_v50  ;;  %v3821_v7 = vpack.c.bf16 %v997_v22, %v3699_v37  ;;  %1572 = vrot.lane.b32.xlu1 %v1442_v45, %s3316_s19  ;;  %v1034_v14 = vrot.slane %v1032_v48, 7  ;;  %s252_s19 = scalar_lea.vmem [#allocation3], %s2771_s10 }
  0x75   : > { %3204 = vmatprep.subr.msk.bf16.mxu1 %vm1682_vm14, %v3248_v58  ;;  %v1064_v60 = vshrl.u32 %v3565_v21, 16  ;;  %v1067_v61 = vshll.u32 %v3565_v21, 16  ;;  %v557_v55 = vand.u32 15, %v467_v47  ;;  %v471_v38 = vadd.s32 104, %v3406_v1  ;;  %s2683_s20 = sshll.u32 %s252_s19, 4  ;;  %s4196_s20 = int_to_ptr.vmem [resolvable:$true] %s2683_s20 }
  0x76   : > { %v1042_v62 = vrot.slane %v1040_v51, 7  ;;  %v1080_v10 = vshrl.u32 %v3625_v54, 16  ;;  %v1037_v57 = vor.u32 %v1035_v49, %v1034_v14  ;;  %v1083_v37 = vshll.u32 %v3625_v54, 16  ;;  %s3251_s25 = scalar_lea.vmem %s4196_s20, 32  ;;  %p3258_p0 = scmp.lt.s32.totalorder %s4196_s20, %s3256_s13 }
  0x77   : > { %v1607_v0 = vld [vmem:[#allocation2] sm:$0xff]  ;;  %v1066_v41 = vrot.slane %v1064_v60, 7  ;;  %v475_v22 = vadd.s32 136, %v3406_v1  ;;  %vm883_vm4 = vcmp.eq.s32.totalorder %v557_v55, 15  ;;  %v585_v21 = vand.u32 15, %v471_v38  ;;  %p3252_p11 = scmp.ne.s32.totalorder %s4196_s20, %s3251_s25  ;;  %p3259_p1 = scmp.lt.s32.totalorder %s3257_s14, %s3251_s25 }
  0x78   : > { %v1045_v3 = vor.u32 %v1043_v53, %v1042_v62  ;;  %3070 = vmatprep.mubr.msk.bf16.mxu0 %vm264_vm15, %v1607_v0  ;;  %v1054_v58 = vsel %vm1023_vm8, %v1042_v62, %v1053_v59  ;;  %v1038_v4 = vsel %vm1023_vm8, %v3746_v40, %v1037_v57  ;;  %v979_v6 = vsel %vm883_vm4, 0.0, %v3545_v52 }
  0x79   : > { %1447 = vst.msk [vmem:[#allocation2 + $0x20] sm:$0xff] %vm1443_vm11, %v1054_v58  ;;  %v1069_v19 = vor.u32 %v1067_v61, %v1066_v41  ;;  %v1082_v20 = vrot.slane %v1080_v10, 7  ;;  %1445 = vst.msk [vmem:[#allocation2 + $0x10] sm:$0xff] %vm1443_vm11, %v1038_v4  ;;  %v1006_v23 = vpack.c.bf16 %v979_v6, %v3531_v42  ;;  %vm887_vm5 = vcmp.eq.s32.totalorder %v585_v21, 15  ;;  %p3253_p12 = pnand %p3252_p11, %p3392_p5  ;;  %p3260_p2 = por %p3259_p1, %p3258_p0 }
  0x7a   : > { %v1046_v54 = vsel %vm1023_vm8, %v1034_v14, %v1045_v3  ;;  %v613_v18 = vand.u32 15, %v475_v22  ;;  %v983_v27 = vsel %vm887_vm5, 0.0, %v3572_v30  ;;  %v1096_v40 = vshrl.u32 %v3659_v9, 16 }
  0x7b   : > { %1446 = vst.msk [vmem:[#allocation2 + $0x18] sm:$0xff] %vm1443_vm11, %v1046_v54  ;;  %v1085_v28 = vor.u32 %v1083_v37, %v1082_v20  ;;  %v1099_v31 = vshll.u32 %v3659_v9, 16  ;;  %v1056_v52 = vshrl.u32 %v1006_v23, 16  ;;  %v1059_v2 = vshll.u32 %v1006_v23, 16  ;;  %p3254_p13 = pneg %p3253_p12 }
  0x7c   : > { %v1008_v32 = vpack.c.bf16 %v983_v27, %v3569_v24  ;;  %vm891_vm6 = vcmp.eq.s32.totalorder %v613_v18, 15  ;;  %v1098_v34 = vrot.slane %v1096_v40, 7  ;;  %v479_v42 = vadd.s32 168, %v3406_v1 }
  0x7d   : > { %v987_v33 = vsel %vm891_vm6, 0.0, %v3606_v25  ;;  %v1112_v35 = vshrl.u32 %v3705_v56, 16  ;;  %v1058_v36 = vrot.slane %v1056_v52, 7  ;;  %v1115_v48 = vshll.u32 %v3705_v56, 16  ;;  %p3261_p3 = pnand %p3260_p2, %p3254_p13 }
  0x7e   : > { %v1072_v46 = vshrl.u32 %v1008_v32, 16  ;;  %v1075_v30 = vshll.u32 %v1008_v32, 16  ;;  %v1010_v39 = vpack.c.bf16 %v987_v33, %v3602_v13  ;;  %v1101_v44 = vor.u32 %v1099_v31, %v1098_v34 }
  0x7f   : > { %v641_v45 = vand.u32 15, %v479_v42  ;;  %v1114_v9 = vrot.slane %v1112_v35, 7  ;;  %v1061_v49 = vor.u32 %v1059_v2, %v1058_v36  ;;  %v1070_v24 = vsel %vm1023_vm8, %v1058_v36, %v1069_v19 }
  0x80   : > { %v1074_v50 = vrot.slane %v1072_v46, 7  ;;  %v1088_v25 = vshrl.u32 %v1010_v39, 16  ;;  %1449 = vst.msk [vmem:[#allocation2 + $0x30] sm:$0xff] %vm1443_vm11, %v1070_v24  ;;  %v1091_v51 = vshll.u32 %v1010_v39, 16  ;;  %v483_v53 = vadd.s32 200, %v3406_v1 }
  0x81   : > { %vm895_vm7 = vcmp.eq.s32.totalorder %v641_v45, 15  ;;  %v1062_v59 = vsel %vm1023_vm8, %v3806_v43, %v1061_v49  ;;  %v1117_v60 = vor.u32 %v1115_v48, %v1114_v9  ;;  %v1128_v62 = vshrl.u32 %v3821_v7, 16 }
  0x82   : > { %v1077_v13 = vor.u32 %v1075_v30, %v1074_v50  ;;  %v1086_v47 = vsel %vm1023_vm8, %v1074_v50, %v1085_v28  ;;  %v1090_v14 = vrot.slane %v1088_v25, 7  ;;  %1448 = vst.msk [vmem:[#allocation2 + $0x28] sm:$0xff] %vm1443_vm11, %v1062_v59  ;;  %v991_v56 = vsel %vm895_vm7, 0.0, %v3639_v12 }
  0x83   : > { %1451 = vst.msk [vmem:[#allocation2 + $0x40] sm:$0xff] %vm1443_vm11, %v1086_v47  ;;  %v669_v61 = vand.u32 15, %v483_v53  ;;  %v1012_v43 = vpack.c.bf16 %v991_v56, %v3636_v5  ;;  %v1130_v57 = vrot.slane %v1128_v62, 7  ;;  %v1131_v0 = vshll.u32 %v3821_v7, 16 }
  0x84   : > { %v1078_v55 = vsel %vm1023_vm8, %v1066_v41, %v1077_v13  ;;  %v1093_v38 = vor.u32 %v1091_v51, %v1090_v14  ;;  %v1102_v10 = vsel %vm1023_vm8, %v1090_v14, %v1101_v44  ;;  %v487_v12 = vadd.s32 232, %v3406_v1 }
  0x85   : > { %1450 = vst.msk [vmem:[#allocation2 + $0x38] sm:$0xff] %vm1443_vm11, %v1078_v55  ;;  %1453 = vst.msk [vmem:[#allocation2 + $0x50] sm:$0xff] %vm1443_vm11, %v1102_v10  ;;  %vm899_vm10 = vcmp.eq.s32.totalorder %v669_v61, 15  ;;  %v1104_v22 = vshrl.u32 %v1012_v43, 16  ;;  %v1107_v3 = vshll.u32 %v1012_v43, 16  ;;  %v1143_v4 = vshll.u32 %v3754_v63, 16 }
  0x86   : > { %v1094_v37 = vsel %vm1023_vm8, %v1082_v20, %v1093_v38  ;;  %v995_v41 = vsel %vm899_vm10, 0.0, %v3686_v26  ;;  %v697_v58 = vand.u32 15, %v487_v12  ;;  %v1133_v54 = vor.u32 %v1131_v0, %v1130_v57 }
  0x87   : > { %1452 = vst.msk [vmem:[#allocation2 + $0x48] sm:$0xff] %vm1443_vm11, %v1094_v37  ;;  %v1014_v5 = vpack.c.bf16 %v995_v41, %v3674_v15  ;;  %v1106_v21 = vrot.slane %v1104_v22, 7  ;;  %v1145_v18 = vor.u32 %v1143_v4, %v3786_v29  ;;  %vm1524_vm13 = vcmask 64544  }
  0x88   : > { %vm903_vm12 = vcmp.eq.s32.totalorder %v697_v58, 15  ;;  %vm1590_vm0 = vcmask 97344   ;;  %v2092_v36 = vsel %vm1682_vm14, %v3762_v17, 0 }
  0x89   : > { %v1120_v6 = vshrl.u32 %v1014_v5, 16  ;;  %v1123_v19 = vshll.u32 %v1014_v5, 16  ;;  %v1109_v7 = vor.u32 %v1107_v3, %v1106_v21  ;;  %v1118_v1 = vsel %vm1023_vm8, %v1106_v21, %v1117_v60 }
  0x8a   : > { %v999_v20 = vsel %vm903_vm12, 0.0, %v3724_v16  ;;  %1455 = vst.msk [vmem:[#allocation2 + $0x60] sm:$0xff] %vm1443_vm11, %v1118_v1  ;;  %v2034_v1 = vld [vmem:[#allocation2 + $0x88] sm:$0xff] }
  0x8b   : > { %v1122_v26 = vrot.slane %v1120_v6, 7  ;;  %v1016_v23 = vpack.c.bf16 %v999_v20, %v3721_v11  ;;  %v1110_v15 = vsel %vm1023_vm8, %v1098_v34, %v1109_v7 }
  0x8c   : > { %1454 = vst.msk [vmem:[#allocation2 + $0x58] sm:$0xff] %vm1443_vm11, %v1110_v15 }
  0x8d   : > { %v1125_v63 = vor.u32 %v1123_v19, %v1122_v26  ;;  %v1134_v27 = vsel %vm1023_vm8, %v1122_v26, %v1133_v54  ;;  %v1136_v28 = vshrl.u32 %v1016_v23, 16  ;;  %v1139_v40 = vshll.u32 %v1016_v23, 16 }
  0x8e   : > { %1457 = vst.msk [vmem:[#allocation2 + $0x70] sm:$0xff] %vm1443_vm11, %v1134_v27 }
  0x8f   : > { %v1126_v16 = vsel %vm1023_vm8, %v1114_v9, %v1125_v63  ;;  %v1138_v31 = vrot.slane %v1136_v28, 7 }
  0x90   : > { %1456 = vst.msk [vmem:[#allocation2 + $0x68] sm:$0xff] %vm1443_vm11, %v1126_v16 }
  0x91   : > { %v1141_v52 = vor.u32 %v1139_v40, %v1138_v31  ;;  %v1146_v11 = vsel %vm1023_vm8, %v1138_v31, %v1145_v18 }
  0x92   : > { %1459 = vst.msk [vmem:[#allocation2 + $0x80] sm:$0xff] %vm1443_vm11, %v1146_v11 }
  0x93   : > { %v1142_v29 = vsel %vm1023_vm8, %v1130_v57, %v1141_v52  ;;  %vm2628_vm8 = vcmask 27648  }
  0x94   : > { %1458 = vst.msk [vmem:[#allocation2 + $0x78] sm:$0xff] %vm1443_vm11, %v1142_v29 }
  0x96   : > { %v1477_v2 = vpop.permute.xlu0 %1476 }
  0x97   : > { %1525 = vst.msk [vmem:[#allocation2 + $0x8] sm:$0xff] %vm1524_vm13, %v1477_v2 }
  0x9a   : > { %v1479_v32 = vpop.permute.xlu0 %1478 }
  0x9b   : > { %1526 = vst.msk [vmem:[#allocation2 + $0x10] sm:$0xff] %vm1524_vm13, %v1479_v32 }
  0x9e   : > { %v1543_v33 = vpop.permute.xlu1 %1542  ;;  %v1481_v34 = vpop.permute.xlu0 %1480 }
  0x9f   : > { %1591 = vst.msk [vmem:[#allocation2 + $0x8] sm:$0xff] %vm1590_vm0, %v1543_v33  ;;  %v3986_v33 = vld [vmem:[%s4241_s4] ss:$0 sm:$0xff] }
  0xa0   : > { %1527 = vst.msk [vmem:[#allocation2 + $0x18] sm:$0xff] %vm1524_vm13, %v1481_v34 }
  0xa2   : > { %v1545_v42 = vpop.permute.xlu1 %1544 }
  0xa3   : > { %1592 = vst.msk [vmem:[#allocation2 + $0x10] sm:$0xff] %vm1590_vm0, %v1545_v42 }
  0xa4   : > { %v1547_v35 = vpop.permute.xlu0 %1546 }
  0xa5   : > { %1593 = vst.msk [vmem:[#allocation2 + $0x18] sm:$0xff] %vm1590_vm0, %v1547_v35 }
  0xa6   : > { %v1483_v46 = vpop.permute.xlu1 %1482  ;;  %v1608_v30 = vld [vmem:[#allocation2 + $0x8] sm:$0xff] }
  0xa7   : > { %1528 = vst.msk [vmem:[#allocation2 + $0x20] sm:$0xff] %vm1524_vm13, %v1483_v46  ;;  %3036 = vmatprep.mubr.msk.bf16.mxu1 %vm264_vm15, %v1608_v30  ;;  %3071 = vmatmul.mubr.msk.bf16.vlgmr.msra.gmra.mrb[0].mxu0 %vm264_vm15, %v1608_v30 }
  0xa8   : > { %3103 = vmatpush3.bf16.msra.mxu0 %v2092_v36  ;;  %v1485_v39 = vpop.permute.xlu0 %1484 }
  0xa9   : > { %1529 = vst.msk [vmem:[#allocation2 + $0x28] sm:$0xff] %vm1524_vm13, %v1485_v39 }
  0xaa   : > { %v1609_v44 = vld [vmem:[#allocation2 + $0x10] sm:$0xff]  ;;  %v1549_v45 = vpop.permute.xlu1 %1548 }
  0xab   : > { %3037 = vmatmul.mubr.msk.bf16.vlgmr.msra.gmra.mrb[0].mxu1 %vm264_vm15, %v1609_v44  ;;  %3074 = vmatprep.mubr.msk.bf16.mxu0 %vm264_vm15, %v1609_v44  ;;  %1594 = vst.msk [vmem:[#allocation2 + $0x20] sm:$0xff] %vm1590_vm0, %v1549_v45 }
  0xac   : > { %3137 = vmatpush3.bf16.msra.mxu1 %v3777_v8  ;;  %v1610_v17 = vld [vmem:[#allocation2 + $0x18] sm:$0xff] }
  0xad   : > { %3040 = vmatprep.mubr.msk.bf16.mxu1 %vm264_vm15, %v1610_v17 }
  0xae   : > { %v1487_v9 = vpop.permute.xlu1 %1486  ;;  %v1551_v48 = vpop.permute.xlu0 %1550 }
  0xaf   : > { %3075 = vmatmul.mubr.msk.bf16.gmra.mrb[4].mxu0 %vm264_vm15, %v1610_v17  ;;  %1530 = vst.msk [vmem:[#allocation2 + $0x30] sm:$0xff] %vm1524_vm13, %v1487_v9 }
  0xb0   : > { %1595 = vst.msk [vmem:[#allocation2 + $0x28] sm:$0xff] %vm1590_vm0, %v1551_v48 }
  0xb2   : > { %v1489_v49 = vpop.permute.xlu0 %1488  ;;  %v1611_v24 = vld [vmem:[#allocation2 + $0x20] sm:$0xff] }
  0xb3   : > { %v1553_v50 = vpop.permute.xlu1 %1552  ;;  %1531 = vst.msk [vmem:[#allocation2 + $0x38] sm:$0xff] %vm1524_vm13, %v1489_v49  ;;  %3041 = vmatmul.mubr.msk.bf16.gmra.mrb[4].mxu1 %vm264_vm15, %v1611_v24  ;;  %3078 = vmatprep.mubr.msk.bf16.mxu0 %vm264_vm15, %v1611_v24 }
  0xb4   : > { %1596 = vst.msk [vmem:[#allocation2 + $0x30] sm:$0xff] %vm1590_vm0, %v1553_v50 }
  0xb7   : > { %v1612_v8 = vld [vmem:[#allocation2 + $0x28] sm:$0xff]  ;;  %v1491_v25 = vpop.permute.xlu1 %1490 }
  0xb8   : > { %3079 = vmatmul.mubr.msk.bf16.gmra.mrb[8].mxu0 %vm264_vm15, %v1612_v8  ;;  %3044 = vmatprep.mubr.msk.bf16.mxu1 %vm264_vm15, %v1612_v8  ;;  %1532 = vst.msk [vmem:[#allocation2 + $0x40] sm:$0xff] %vm1524_vm13, %v1491_v25 }
  0xb9   : > { %v1555_v51 = vpop.permute.xlu0 %1554 }
  0xba   : > { %1597 = vst.msk [vmem:[#allocation2 + $0x38] sm:$0xff] %vm1590_vm0, %v1555_v51 }
  0xbb   : > { %v1613_v53 = vld [vmem:[#allocation2 + $0x30] sm:$0xff] }
  0xbc   : > { %3045 = vmatmul.mubr.msk.bf16.gmra.mrb[8].mxu1 %vm264_vm15, %v1613_v53  ;;  %3082 = vmatprep.mubr.msk.bf16.mxu0 %vm264_vm15, %v1613_v53 }
  0xbd   : > { %v1493_v59 = vpop.permute.xlu0 %1492 }
  0xbe   : > { %1533 = vst.msk [vmem:[#allocation2 + $0x48] sm:$0xff] %vm1524_vm13, %v1493_v59  ;;  %v1557_v13 = vpop.permute.xlu1 %1556 }
  0xbf   : > { %1598 = vst.msk [vmem:[#allocation2 + $0x40] sm:$0xff] %vm1590_vm0, %v1557_v13 }
  0xc1   : > { %v1614_v47 = vld [vmem:[#allocation2 + $0x38] sm:$0xff] }
  0xc2   : > { %3083 = vmatmul.mubr.msk.bf16.gmra.mrb[12].mxu0 %vm264_vm15, %v1614_v47  ;;  %3048 = vmatprep.mubr.msk.bf16.mxu1 %vm264_vm15, %v1614_v47  ;;  %v1495_v14 = vpop.permute.xlu1 %1494 }
  0xc3   : > { %3104 = vmatprep.mubr.msk.bf16.mxu0 %vm264_vm15, %v1609_v44  ;;  %1534 = vst.msk [vmem:[#allocation2 + $0x50] sm:$0xff] %vm1524_vm13, %v1495_v14 }
  0xc4   : > { %v1559_v56 = vpop.permute.xlu0 %1558 }
  0xc5   : > { %1599 = vst.msk [vmem:[#allocation2 + $0x48] sm:$0xff] %vm1590_vm0, %v1559_v56 }
  0xc6   : > { %v1615_v60 = vld [vmem:[#allocation2 + $0x40] sm:$0xff] }
  0xc7   : > { %3049 = vmatmul.mubr.msk.bf16.gmra.mrb[12].mxu1 %vm264_vm15, %v1615_v60 }
  0xc8   : > { %v1561_v61 = vpop.permute.xlu1 %1560  ;;  %v1497_v62 = vpop.permute.xlu0 %1496 }
  0xc9   : > { %1600 = vst.msk [vmem:[#allocation2 + $0x50] sm:$0xff] %vm1590_vm0, %v1561_v61 }
  0xca   : > { %1535 = vst.msk [vmem:[#allocation2 + $0x58] sm:$0xff] %vm1524_vm13, %v1497_v62  ;;  %3105 = vmatmul.mubr.msk.bf16.vlgmr.msra.gmra.mrb[0].mxu0 %vm264_vm15, %v1610_v17 }
  0xcb   : > { %3108 = vmatprep.mubr.msk.bf16.mxu0 %vm264_vm15, %v1611_v24 }
  0xcc   : > { %v1499_v55 = vpop.permute.xlu1 %1498  ;;  %v1616_v38 = vld [vmem:[#allocation2 + $0x48] sm:$0xff] }
  0xcd   : > { %1536 = vst.msk [vmem:[#allocation2 + $0x60] sm:$0xff] %vm1524_vm13, %v1499_v55  ;;  %3052 = vmatprep.mubr.msk.bf16.mxu1 %vm264_vm15, %v1616_v38 }
  0xce   : > { %v1563_v10 = vpop.permute.xlu0 %1562 }
  0xcf   : > { %1601 = vst.msk [vmem:[#allocation2 + $0x58] sm:$0xff] %vm1590_vm0, %v1563_v10 }
  0xd0   : > { %v1617_v43 = vld [vmem:[#allocation2 + $0x50] sm:$0xff] }
  0xd1   : > { %3053 = vmatmul.mubr.msk.bf16.gmra.mrb[16].mxu1 %vm264_vm15, %v1617_v43 }
  0xd2   : > { %v1501_v57 = vpop.permute.xlu0 %1500  ;;  %3109 = vmatmul.mubr.msk.bf16.gmra.mrb[4].mxu0 %vm264_vm15, %v1612_v8 }
  0xd3   : > { %1537 = vst.msk [vmem:[#allocation2 + $0x68] sm:$0xff] %vm1524_vm13, %v1501_v57  ;;  %3112 = vmatprep.mubr.msk.bf16.mxu0 %vm264_vm15, %v1613_v53 }
  0xd4   : > { %v1565_v0 = vpop.permute.xlu1 %1564 }
  0xd5   : > { %1602 = vst.msk [vmem:[#allocation2 + $0x60] sm:$0xff] %vm1590_vm0, %v1565_v0 }
  0xd6   : > { %v1618_v12 = vld [vmem:[#allocation2 + $0x58] sm:$0xff] }
  0xd7   : > { %3056 = vmatprep.mubr.msk.bf16.mxu1 %vm264_vm15, %v1618_v12 }
  0xd8   : > { %v1503_v37 = vpop.permute.xlu1 %1502 }
  0xd9   : > { %v1567_v22 = vpop.permute.xlu0 %1566  ;;  %1538 = vst.msk [vmem:[#allocation2 + $0x70] sm:$0xff] %vm1524_vm13, %v1503_v37 }
  0xda   : > { %1603 = vst.msk [vmem:[#allocation2 + $0x68] sm:$0xff] %vm1590_vm0, %v1567_v22  ;;  %3113 = vmatmul.mubr.msk.bf16.gmra.mrb[8].mxu0 %vm264_vm15, %v1614_v47 }
  0xdb   : > { %3116 = vmatprep.mubr.msk.bf16.mxu0 %vm264_vm15, %v1615_v60 }
  0xdc   : > { %v1619_v3 = vld [vmem:[#allocation2 + $0x60] sm:$0xff] }
  0xdd   : > { %v1505_v41 = vpop.permute.xlu0 %1504  ;;  %3057 = vmatmul.mubr.msk.bf16.gmra.mrb[20].mxu1 %vm264_vm15, %v1619_v3 }
  0xde   : > { %v1569_v5 = vpop.permute.xlu1 %1568  ;;  %1539 = vst.msk [vmem:[#allocation2 + $0x78] sm:$0xff] %vm1524_vm13, %v1505_v41 }
  0xdf   : > { %1604 = vst.msk [vmem:[#allocation2 + $0x70] sm:$0xff] %vm1590_vm0, %v1569_v5 }
  0xe1   : > { %v1620_v58 = vld [vmem:[#allocation2 + $0x68] sm:$0xff] }
  0xe2   : > { %v1507_v21 = vpop.permute.xlu1 %1506  ;;  %3060 = vmatprep.mubr.msk.bf16.mxu1 %vm264_vm15, %v1620_v58  ;;  %3117 = vmatmul.mubr.msk.bf16.gmra.mrb[12].mxu0 %vm264_vm15, %v1616_v38 }
  0xe3   : > { %1540 = vst.msk [vmem:[#allocation2 + $0x80] sm:$0xff] %vm1524_vm13, %v1507_v21  ;;  %3120 = vmatprep.mubr.msk.bf16.mxu0 %vm264_vm15, %v1617_v43 }
  0xe4   : > { %v1571_v4 = vpop.permute.xlu0 %1570 }
  0xe5   : > { %1605 = vst.msk [vmem:[#allocation2 + $0x78] sm:$0xff] %vm1590_vm0, %v1571_v4 }
  0xe6   : > { %v1573_v6 = vpop.permute.xlu1 %1572  ;;  %v1621_v19 = vld [vmem:[#allocation2 + $0x70] sm:$0xff] }
  0xe7   : > { %1606 = vst.msk [vmem:[#allocation2 + $0x80] sm:$0xff] %vm1590_vm0, %v1573_v6  ;;  %3061 = vmatmul.mubr.msk.bf16.gmra.mrb[24].mxu1 %vm264_vm15, %v1621_v19 }
  0xea   : > { %3121 = vmatmul.mubr.msk.bf16.gmra.mrb[16].mxu0 %vm264_vm15, %v1618_v12 }
  0xeb   : > { %3124 = vmatprep.mubr.msk.bf16.mxu0 %vm264_vm15, %v1619_v3 }
  0xec   : > { %v1622_v54 = vld [vmem:[#allocation2 + $0x78] sm:$0xff] }
  0xed   : > { %3064 = vmatprep.mubr.msk.bf16.mxu1 %vm264_vm15, %v1622_v54 }
  0xee   : > { %v1625_v7 = vld [vmem:[#allocation2 + $0x80] sm:$0xff] }
  0xef   : > { %3065 = vmatmul.mubr.msk.bf16.gmra.mrb[28].mxu1 %vm264_vm15, %v1625_v7 }
  0xf0   : > { %3086 = vmatprep.mubr.msk.bf16.mxu1 %vm264_vm15, %v1615_v60 }
  0xf2   : > { %3125 = vmatmul.mubr.msk.bf16.gmra.mrb[20].mxu0 %vm264_vm15, %v1620_v58 }
  0xf3   : > { %3128 = vmatprep.mubr.msk.bf16.mxu0 %vm264_vm15, %v1621_v19 }
  0xf7   : > { %3087 = vmatmul.mubr.msk.bf16.vlgmr.msra.gmra.mrb[16].mxu1 %vm264_vm15, %v1616_v38 }
  0xf8   : > { %3090 = vmatprep.mubr.msk.bf16.mxu1 %vm264_vm15, %v1617_v43 }
  0xfa   : > { %3129 = vmatmul.mubr.msk.bf16.gmra.mrb[24].mxu0 %vm264_vm15, %v1622_v54 }
  0xfb   : > { %3132 = vmatprep.mubr.msk.bf16.mxu0 %vm264_vm15, %v1625_v7 }
  0xff   : > { %3091 = vmatmul.mubr.msk.bf16.gmra.mrb[20].mxu1 %vm264_vm15, %v1618_v12 }
 0x100   : > { %3094 = vmatprep.mubr.msk.bf16.mxu1 %vm264_vm15, %v1619_v3 }
 0x102   : > { %3133 = vmatmul.mubr.msk.bf16.gmra.mrb[28].mxu0 %vm264_vm15, %v2034_v1 }
 0x107   : > { %3095 = vmatmul.mubr.msk.bf16.gmra.mrb[24].mxu1 %vm264_vm15, %v1620_v58 }
 0x108   : > { %3098 = vmatprep.mubr.msk.bf16.mxu1 %vm264_vm15, %v1621_v19 }
 0x10f   : > { %3099 = vmatmul.mubr.msk.bf16.gmra.mrb[28].mxu1 %vm264_vm15, %v1622_v54 }
 0x17e   : > { %v3038_v20 = vpop.f32.mrb[0].mxu1 }
 0x17f   : > { %v1720_v26 = vpop.f32.mrb[1].mxu1 }
 0x180   : > { %v3039_v23 = vpop.f32.mrb[2].mxu1 }
 0x181   : > { %v1723_v15 = vpop.f32.mrb[3].mxu1 }
 0x186   : > { %v3042_v18 = vpop.f32.mrb[4].mxu1 }
 0x187   : > { %v1736_v63 = vpop.f32.mrb[5].mxu1 }
 0x188   : > { %v3043_v27 = vpop.f32.mrb[6].mxu1 }
 0x189   : > { %v1739_v28 = vpop.f32.mrb[7].mxu1 }
 0x18f   : > { %v3969_v40 = vpop.f32.mrb[8].mxu1 }
 0x190   : > { %v3971_v16 = vpop.f32.mrb[9].mxu1 }
 0x191   : > { %v3973_v31 = vpop.f32.mrb[10].mxu1 }
 0x192   : > { %v3975_v52 = vpop.f32.mrb[11].mxu1 }
 0x19a   : > { %v3977_v11 = vpop.f32.mrb[12].mxu1 }
 0x19b   : > { %v3979_v29 = vpop.f32.mrb[13].mxu1 }
 0x19c   : > { %v3981_v2 = vpop.f32.mrb[14].mxu1 }
 0x19d   : > { %v3106_v32 = vpop.f32.mrb[0].mxu0  ;;  %v3988_v34 = vpop.f32.mrb[15].mxu1 }
 0x19e   : > { %v3138_v42 = vadd.f32 %v3106_v32, %v3038_v20  ;;  %v2128_v35 = vpop.f32.mrb[1].mxu0 }
 0x19f   : > { %v3139_v36 = vadd.f32 %v2128_v35, %v1720_v26  ;;  %v3107_v46 = vpop.f32.mrb[2].mxu0 }
 0x1a0   : > { %v2296_v30 = vadd.f32 %v3138_v42, %v3986_v33  ;;  %v3140_v39 = vadd.f32 %v3107_v46, %v3039_v23  ;;  %v2131_v44 = vpop.f32.mrb[3].mxu0 }
 0x1a1   : > { %v2294_v45 = vadd.f32 %v3139_v36, %v3986_v33  ;;  %v3141_v17 = vadd.f32 %v2131_v44, %v1723_v15 }
 0x1a2   : > { %v2874_v9 = vpack.c.bf16 %v2296_v30, %v2296_v30  ;;  %v2297_v48 = vadd.f32 %v3140_v39, %v3986_v33  ;;  %v2397_v8 = vmul.f32 %v2296_v30, %v2296_v30  ;;  %v2329_v62 = vsel %vm1443_vm11, %v2296_v30, 0.0 }
 0x1a3   : > { %v2395_v49 = vmul.f32 %v2294_v45, %v2294_v45  ;;  %v2872_v24 = vpack.c.bf16 %v2294_v45, %v2294_v45  ;;  %v2295_v50 = vadd.f32 %v3141_v17, %v3986_v33  ;;  %v2326_v51 = vsel %vm1443_vm11, %v2294_v45, 0.0 }
 0x1a4   : > { %2631 = vst.msk [vmem:[%s3996_s17 + $0x8] sm:$0xf] %vm2628_vm8, %v2874_v9  ;;  %v2875_v25 = vpack.c.bf16 %v2297_v48, %v2297_v48  ;;  %v2398_v14 = vmul.f32 %v2297_v48, %v2297_v48  ;;  %v2430_v3 = vsel %vm1443_vm11, %v2397_v8, 0.0  ;;  %v2331_v58 = vsel %vm1443_vm11, %v2297_v48, 0.0 }
 0x1a5   : > { %2629 = vst.msk [vmem:[%s3996_s17] sm:$0xf] %vm2628_vm8, %v2872_v24  ;;  %v2327_v53 = vsel %vm1443_vm11, %v2295_v50, 0.0  ;;  %v2396_v59 = vmul.f32 %v2295_v50, %v2295_v50  ;;  %v2873_v13 = vpack.c.bf16 %v2295_v50, %v2295_v50  ;;  %v3110_v47 = vpop.f32.mrb[4].mxu0  ;;  %v2427_v55 = vsel %vm1443_vm11, %v2395_v49, 0.0 }
 0x1a6   : > { %2632 = vst.msk [vmem:[%s3996_s17 + $0xc] sm:$0xf] %vm2628_vm8, %v2875_v25  ;;  %v2328_v56 = vadd.f32 %v2327_v53, %v2326_v51  ;;  %v3142_v60 = vadd.f32 %v3110_v47, %v3042_v18  ;;  %v2144_v61 = vpop.f32.mrb[5].mxu0  ;;  %v2432_v21 = vsel %vm1443_vm11, %v2398_v14, 0.0 }
 0x1a7   : > { %v2428_v38 = vsel %vm1443_vm11, %v2396_v59, 0.0  ;;  %2630 = vst.msk [vmem:[%s3996_s17 + $0x4] sm:$0xf] %vm2628_vm8, %v2873_v13  ;;  %v3143_v10 = vadd.f32 %v2144_v61, %v1736_v63  ;;  %v3111_v43 = vpop.f32.mrb[6].mxu0 }
 0x1a8   : > { %v2330_v57 = vadd.f32 %v2329_v62, %v2328_v56  ;;  %v2429_v0 = vadd.f32 %v2428_v38, %v2427_v55  ;;  %v2300_v12 = vadd.f32 %v3142_v60, %v3986_v33  ;;  %v3144_v37 = vadd.f32 %v3111_v43, %v3043_v27  ;;  %v2147_v22 = vpop.f32.mrb[7].mxu0 }
 0x1a9   : > { %v2298_v41 = vadd.f32 %v3143_v10, %v3986_v33  ;;  %v3145_v5 = vadd.f32 %v2147_v22, %v1739_v28 }
 0x1aa   : > { %v2431_v4 = vadd.f32 %v2430_v3, %v2429_v0  ;;  %v2878_v6 = vpack.c.bf16 %v2300_v12, %v2300_v12  ;;  %v2332_v19 = vadd.f32 %v2331_v58, %v2330_v57  ;;  %v2301_v26 = vadd.f32 %v3144_v37, %v3986_v33 }
 0x1ab   : > { %v2333_v54 = vsel %vm1443_vm11, %v2298_v41, 0.0  ;;  %v2399_v7 = vmul.f32 %v2298_v41, %v2298_v41  ;;  %v2876_v1 = vpack.c.bf16 %v2298_v41, %v2298_v41  ;;  %v2299_v23 = vadd.f32 %v3145_v5, %v3986_v33 }
 0x1ac   : > { %2635 = vst.msk [vmem:[%s3996_s17 + $0x18] sm:$0xf] %vm2628_vm8, %v2878_v6  ;;  %v2433_v20 = vadd.f32 %v2432_v21, %v2431_v4  ;;  %v2334_v15 = vadd.f32 %v2333_v54, %v2332_v19  ;;  %v2401_v27 = vmul.f32 %v2300_v12, %v2300_v12  ;;  %v2879_v32 = vpack.c.bf16 %v2301_v26, %v2301_v26 }
 0x1ad   : > { %v2434_v18 = vsel %vm1443_vm11, %v2399_v7, 0.0  ;;  %2633 = vst.msk [vmem:[%s3996_s17 + $0x10] sm:$0xf] %vm2628_vm8, %v2876_v1  ;;  %v3114_v63 = vpop.f32.mrb[8].mxu0  ;;  %v2335_v35 = vsel %vm1443_vm11, %v2299_v23, 0.0  ;;  %v2400_v36 = vmul.f32 %v2299_v23, %v2299_v23  ;;  %v2877_v46 = vpack.c.bf16 %v2299_v23, %v2299_v23 }
 0x1ae   : > { %v2435_v28 = vadd.f32 %v2434_v18, %v2433_v20  ;;  %v2160_v42 = vpop.f32.mrb[9].mxu0  ;;  %v3146_v30 = vadd.f32 %v3114_v63, %v3969_v40  ;;  %v2337_v44 = vsel %vm1443_vm11, %v2300_v12, 0.0  ;;  %2636 = vst.msk [vmem:[%s3996_s17 + $0x1c] sm:$0xf] %vm2628_vm8, %v2879_v32  ;;  %v2336_v45 = vadd.f32 %v2335_v35, %v2334_v15 }
 0x1af   : > { %v3115_v39 = vpop.f32.mrb[10].mxu0  ;;  %v3147_v17 = vadd.f32 %v2160_v42, %v3971_v16  ;;  %v2402_v49 = vmul.f32 %v2301_v26, %v2301_v26  ;;  %v2436_v24 = vsel %vm1443_vm11, %v2400_v36, 0.0  ;;  %2634 = vst.msk [vmem:[%s3996_s17 + $0x14] sm:$0xf] %vm2628_vm8, %v2877_v46  ;;  %v2438_v16 = vsel %vm1443_vm11, %v2401_v27, 0.0 }
 0x1b0   : > { %v3148_v9 = vadd.f32 %v3115_v39, %v3973_v31  ;;  %v2163_v48 = vpop.f32.mrb[11].mxu0  ;;  %v2304_v50 = vadd.f32 %v3146_v30, %v3986_v33  ;;  %v2338_v8 = vadd.f32 %v2337_v44, %v2336_v45  ;;  %v2437_v25 = vadd.f32 %v2436_v24, %v2435_v28 }
 0x1b1   : > { %v3149_v40 = vadd.f32 %v2163_v48, %v3975_v52  ;;  %v2302_v51 = vadd.f32 %v3147_v17, %v3986_v33  ;;  %v2339_v31 = vsel %vm1443_vm11, %v2301_v26, 0.0  ;;  %v2440_v52 = vsel %vm1443_vm11, %v2402_v49, 0.0 }
 0x1b2   : > { %v2305_v53 = vadd.f32 %v3148_v9, %v3986_v33  ;;  %v2882_v59 = vpack.c.bf16 %v2304_v50, %v2304_v50  ;;  %v2439_v47 = vadd.f32 %v2438_v16, %v2437_v25  ;;  %v2340_v14 = vadd.f32 %v2339_v31, %v2338_v8 }
 0x1b3   : > { %v2303_v13 = vadd.f32 %v3149_v40, %v3986_v33  ;;  %v2341_v56 = vsel %vm1443_vm11, %v2302_v51, 0.0  ;;  %v2403_v60 = vmul.f32 %v2302_v51, %v2302_v51  ;;  %v2405_v61 = vmul.f32 %v2304_v50, %v2304_v50 }
 0x1b4   : > { %2639 = vst.msk [vmem:[%s3996_s17 + $0x28] sm:$0xf] %vm2628_vm8, %v2882_v59  ;;  %v2880_v62 = vpack.c.bf16 %v2302_v51, %v2302_v51  ;;  %v2342_v38 = vadd.f32 %v2341_v56, %v2340_v14  ;;  %v2441_v10 = vadd.f32 %v2440_v52, %v2439_v47  ;;  %v2883_v57 = vpack.c.bf16 %v2305_v53, %v2305_v53 }
 0x1b5   : > { %v3118_v55 = vpop.f32.mrb[12].mxu0  ;;  %v2442_v43 = vsel %vm1443_vm11, %v2403_v60, 0.0  ;;  %v2406_v12 = vmul.f32 %v2305_v53, %v2305_v53  ;;  %v2343_v37 = vsel %vm1443_vm11, %v2303_v13, 0.0  ;;  %v2404_v22 = vmul.f32 %v2303_v13, %v2303_v13 }
 0x1b6   : > { %v2176_v0 = vpop.f32.mrb[13].mxu0  ;;  %2637 = vst.msk [vmem:[%s3996_s17 + $0x20] sm:$0xf] %vm2628_vm8, %v2880_v62  ;;  %v2881_v3 = vpack.c.bf16 %v2303_v13, %v2303_v13  ;;  %v2443_v5 = vadd.f32 %v2442_v43, %v2441_v10  ;;  %2640 = vst.msk [vmem:[%s3996_s17 + $0x2c] sm:$0xf] %vm2628_vm8, %v2883_v57  ;;  %v2344_v58 = vadd.f32 %v2343_v37, %v2342_v38  ;;  %v2345_v19 = vsel %vm1443_vm11, %v2304_v50, 0.0 }
 0x1b7   : > { %v3119_v41 = vpop.f32.mrb[14].mxu0  ;;  %v3150_v21 = vadd.f32 %v3118_v55, %v3977_v11  ;;  %v3151_v4 = vadd.f32 %v2176_v0, %v3979_v29  ;;  %v2444_v54 = vsel %vm1443_vm11, %v2404_v22, 0.0  ;;  %v2446_v29 = vsel %vm1443_vm11, %v2405_v61, 0.0 }
 0x1b8   : > { %v2179_v6 = vpop.f32.mrb[15].mxu0  ;;  %2638 = vst.msk [vmem:[%s3996_s17 + $0x24] sm:$0xf] %vm2628_vm8, %v2881_v3  ;;  %v3152_v7 = vadd.f32 %v3119_v41, %v3981_v2  ;;  %v2346_v20 = vadd.f32 %v2345_v19, %v2344_v58  ;;  %v2445_v26 = vadd.f32 %v2444_v54, %v2443_v5  ;;  %v2347_v63 = vsel %vm1443_vm11, %v2305_v53, 0.0 }
 0x1b9   : > { %v3153_v1 = vadd.f32 %v2179_v6, %v3988_v34  ;;  %v2308_v23 = vadd.f32 %v3150_v21, %v3986_v33  ;;  %v2306_v11 = vadd.f32 %v3151_v4, %v3986_v33  ;;  %v2448_v2 = vsel %vm1443_vm11, %v2406_v12, 0.0 }
 0x1ba   : > { %v2309_v15 = vadd.f32 %v3152_v7, %v3986_v33  ;;  %v2447_v27 = vadd.f32 %v2446_v29, %v2445_v26  ;;  %v2348_v28 = vadd.f32 %v2347_v63, %v2346_v20 }
 0x1bb   : > { %v2307_v18 = vadd.f32 %v3153_v1, %v3986_v33  ;;  %v2886_v34 = vpack.c.bf16 %v2308_v23, %v2308_v23  ;;  %v2349_v32 = vsel %vm1443_vm11, %v2306_v11, 0.0  ;;  %v2407_v42 = vmul.f32 %v2306_v11, %v2306_v11 }
 0x1bc   : > { %v2884_v35 = vpack.c.bf16 %v2306_v11, %v2306_v11  ;;  %v2449_v46 = vadd.f32 %v2448_v2, %v2447_v27  ;;  %v2350_v39 = vadd.f32 %v2349_v32, %v2348_v28  ;;  %v2887_v45 = vpack.c.bf16 %v2309_v15, %v2309_v15 }
 0x1bd   : > { %v3122_v36 = vpop.f32.mrb[16].mxu0  ;;  %2643 = vst.msk [vmem:[%s3996_s17 + $0x38] sm:$0xf] %vm2628_vm8, %v2886_v34  ;;  %v2450_v44 = vsel %vm1443_vm11, %v2407_v42, 0.0  ;;  %v2351_v17 = vsel %vm1443_vm11, %v2307_v18, 0.0  ;;  %v2409_v48 = vmul.f32 %v2308_v23, %v2308_v23  ;;  %v2408_v24 = vmul.f32 %v2307_v18, %v2307_v18 }
 0x1be   : > { %v2192_v30 = vpop.f32.mrb[17].mxu0  ;;  %2641 = vst.msk [vmem:[%s3996_s17 + $0x30] sm:$0xf] %vm2628_vm8, %v2884_v35  ;;  %v2451_v49 = vadd.f32 %v2450_v44, %v2449_v46  ;;  %v2885_v50 = vpack.c.bf16 %v2307_v18, %v2307_v18  ;;  %2644 = vst.msk [vmem:[%s3996_s17 + $0x3c] sm:$0xf] %vm2628_vm8, %v2887_v45  ;;  %v2352_v8 = vadd.f32 %v2351_v17, %v2350_v39  ;;  %v2353_v25 = vsel %vm1443_vm11, %v2308_v23, 0.0 }
 0x1bf   : > { %v3123_v9 = vpop.f32.mrb[18].mxu0  ;;  %v2410_v51 = vmul.f32 %v2309_v15, %v2309_v15  ;;  %v2452_v53 = vsel %vm1443_vm11, %v2408_v24, 0.0  ;;  %v2454_v59 = vsel %vm1443_vm11, %v2409_v48, 0.0  ;;  %v2355_v13 = vsel %vm1443_vm11, %v2309_v15, 0.0 }
 0x1c0   : > { %v2195_v40 = vpop.f32.mrb[19].mxu0  ;;  %2642 = vst.msk [vmem:[%s3996_s17 + $0x34] sm:$0xf] %vm2628_vm8, %v2885_v50  ;;  %v2354_v16 = vadd.f32 %v2353_v25, %v2352_v8  ;;  %v2453_v31 = vadd.f32 %v2452_v53, %v2451_v49 }
 0x1c1   : > { %v2456_v60 = vsel %vm1443_vm11, %v2410_v51, 0.0 }
 0x1c2   : > { %v2455_v47 = vadd.f32 %v2454_v59, %v2453_v31  ;;  %v2356_v14 = vadd.f32 %v2355_v13, %v2354_v16 }
 0x1c4   : > { %v2457_v61 = vadd.f32 %v2456_v60, %v2455_v47 }
 0x1c5   : > { %v3126_v56 = vpop.f32.mrb[20].mxu0 }
 0x1c6   : > { %v2208_v52 = vpop.f32.mrb[21].mxu0 }
 0x1c7   : > { %v3127_v62 = vpop.f32.mrb[22].mxu0 }
 0x1c8   : > { %v2211_v55 = vpop.f32.mrb[23].mxu0 }
 0x1ca   : > { %v3088_v38 = vpop.f32.mrb[16].mxu1 }
 0x1cb   : > { %v3154_v10 = vadd.f32 %v3122_v36, %v3088_v38  ;;  %v1956_v43 = vpop.f32.mrb[17].mxu1 }
 0x1cc   : > { %v3155_v57 = vadd.f32 %v2192_v30, %v1956_v43  ;;  %v3089_v0 = vpop.f32.mrb[18].mxu1 }
 0x1cd   : > { %v2312_v12 = vadd.f32 %v3154_v10, %v3986_v33  ;;  %v3156_v37 = vadd.f32 %v3123_v9, %v3089_v0  ;;  %v1959_v22 = vpop.f32.mrb[19].mxu1  ;;  %v4086_v3 = vpop.f32.mrb[24].mxu0 }
 0x1ce   : > { %v2310_v41 = vadd.f32 %v3155_v57, %v3986_v33  ;;  %v3157_v5 = vadd.f32 %v2195_v40, %v1959_v22  ;;  %v4089_v58 = vpop.f32.mrb[25].mxu0 }
 0x1cf   : > { %v2890_v21 = vpack.c.bf16 %v2312_v12, %v2312_v12  ;;  %v2313_v4 = vadd.f32 %v3156_v37, %v3986_v33  ;;  %v4092_v6 = vpop.f32.mrb[26].mxu0  ;;  %v2413_v26 = vmul.f32 %v2312_v12, %v2312_v12  ;;  %v2361_v2 = vsel %vm1443_vm11, %v2312_v12, 0.0 }
 0x1d0   : > { %v2357_v19 = vsel %vm1443_vm11, %v2310_v41, 0.0  ;;  %v2411_v54 = vmul.f32 %v2310_v41, %v2310_v41  ;;  %v2888_v7 = vpack.c.bf16 %v2310_v41, %v2310_v41  ;;  %v2311_v1 = vadd.f32 %v3157_v5, %v3986_v33  ;;  %v4096_v20 = vpop.f32.mrb[27].mxu0 }
 0x1d1   : > { %2647 = vst.msk [vmem:[%s3996_s17 + $0x48] sm:$0xf] %vm2628_vm8, %v2890_v21  ;;  %v2358_v23 = vadd.f32 %v2357_v19, %v2356_v14  ;;  %v2891_v29 = vpack.c.bf16 %v2313_v4, %v2313_v4  ;;  %v2414_v42 = vmul.f32 %v2313_v4, %v2313_v4  ;;  %v2462_v39 = vsel %vm1443_vm11, %v2413_v26, 0.0 }
 0x1d2   : > { %v2458_v11 = vsel %vm1443_vm11, %v2411_v54, 0.0  ;;  %2645 = vst.msk [vmem:[%s3996_s17 + $0x40] sm:$0xf] %vm2628_vm8, %v2888_v7  ;;  %v2359_v15 = vsel %vm1443_vm11, %v2311_v1, 0.0  ;;  %v2412_v18 = vmul.f32 %v2311_v1, %v2311_v1  ;;  %v3092_v63 = vpop.f32.mrb[20].mxu1  ;;  %v2889_v28 = vpack.c.bf16 %v2311_v1, %v2311_v1 }
 0x1d3   : > { %v2459_v27 = vadd.f32 %v2458_v11, %v2457_v61  ;;  %v2360_v34 = vadd.f32 %v2359_v15, %v2358_v23  ;;  %v1972_v32 = vpop.f32.mrb[21].mxu1  ;;  %2648 = vst.msk [vmem:[%s3996_s17 + $0x4c] sm:$0xf] %vm2628_vm8, %v2891_v29  ;;  %v3158_v36 = vadd.f32 %v3126_v56, %v3092_v63  ;;  %v2363_v49 = vsel %vm1443_vm11, %v2313_v4, 0.0 }
 0x1d4   : > { %v2460_v35 = vsel %vm1443_vm11, %v2412_v18, 0.0  ;;  %v3159_v46 = vadd.f32 %v2208_v52, %v1972_v32  ;;  %v3093_v30 = vpop.f32.mrb[22].mxu1  ;;  %2646 = vst.msk [vmem:[%s3996_s17 + $0x44] sm:$0xf] %vm2628_vm8, %v2889_v28  ;;  %v2464_v31 = vsel %vm1443_vm11, %v2414_v42, 0.0 }
 0x1d5   : > { %v2362_v44 = vadd.f32 %v2361_v2, %v2360_v34  ;;  %v2461_v45 = vadd.f32 %v2460_v35, %v2459_v27  ;;  %v3160_v17 = vadd.f32 %v3127_v62, %v3093_v30  ;;  %v1975_v9 = vpop.f32.mrb[23].mxu1  ;;  %v4111_v48 = vpop.f32.mrb[28].mxu0  ;;  %v2316_v24 = vadd.f32 %v3158_v36, %v3986_v33 }
 0x1d6   : > { %v2314_v50 = vadd.f32 %v3159_v46, %v3986_v33  ;;  %v3161_v40 = vadd.f32 %v2211_v55, %v1975_v9  ;;  %v4116_v8 = vpop.f32.mrb[29].mxu0 }
 0x1d7   : > { %v2463_v25 = vadd.f32 %v2462_v39, %v2461_v45  ;;  %v2364_v51 = vadd.f32 %v2363_v49, %v2362_v44  ;;  %v2317_v53 = vadd.f32 %v3160_v17, %v3986_v33  ;;  %v4119_v16 = vpop.f32.mrb[30].mxu0  ;;  %v2894_v59 = vpack.c.bf16 %v2316_v24, %v2316_v24 }
 0x1d8   : > { %v2365_v13 = vsel %vm1443_vm11, %v2314_v50, 0.0  ;;  %v4123_v47 = vpop.f32.mrb[31].mxu0  ;;  %v2415_v56 = vmul.f32 %v2314_v50, %v2314_v50  ;;  %v2892_v52 = vpack.c.bf16 %v2314_v50, %v2314_v50  ;;  %v2417_v55 = vmul.f32 %v2316_v24, %v2316_v24 }
 0x1d9   : > { %v2366_v14 = vadd.f32 %v2365_v13, %v2364_v51  ;;  %v2465_v60 = vadd.f32 %v2464_v31, %v2463_v25  ;;  %2651 = vst.msk [vmem:[%s3996_s17 + $0x58] sm:$0xf] %vm2628_vm8, %v2894_v59  ;;  %v2895_v61 = vpack.c.bf16 %v2317_v53, %v2317_v53  ;;  %v2315_v10 = vadd.f32 %v3161_v40, %v3986_v33 }
 0x1da   : > { %v3096_v62 = vpop.f32.mrb[24].mxu1  ;;  %v2466_v38 = vsel %vm1443_vm11, %v2415_v56, 0.0  ;;  %2649 = vst.msk [vmem:[%s3996_s17 + $0x50] sm:$0xf] %vm2628_vm8, %v2892_v52  ;;  %v2418_v12 = vmul.f32 %v2317_v53, %v2317_v53  ;;  %v2369_v26 = vsel %vm1443_vm11, %v2316_v24, 0.0  ;;  %v2371_v29 = vsel %vm1443_vm11, %v2317_v53, 0.0 }
 0x1db   : > { %v3162_v43 = vadd.f32 %v4086_v3, %v3096_v62  ;;  %v1988_v57 = vpop.f32.mrb[25].mxu1  ;;  %v2467_v0 = vadd.f32 %v2466_v38, %v2465_v60  ;;  %2652 = vst.msk [vmem:[%s3996_s17 + $0x5c] sm:$0xf] %vm2628_vm8, %v2895_v61  ;;  %v2367_v41 = vsel %vm1443_vm11, %v2315_v10, 0.0  ;;  %v2416_v5 = vmul.f32 %v2315_v10, %v2315_v10 }
 0x1dc   : > { %v3163_v37 = vadd.f32 %v4089_v58, %v1988_v57  ;;  %v3097_v22 = vpop.f32.mrb[26].mxu1  ;;  %v2893_v21 = vpack.c.bf16 %v2315_v10, %v2315_v10  ;;  %v2368_v54 = vadd.f32 %v2367_v41, %v2366_v14  ;;  %v2470_v58 = vsel %vm1443_vm11, %v2417_v55, 0.0 }
 0x1dd   : > { %v2320_v4 = vadd.f32 %v3162_v43, %v3986_v33  ;;  %v1991_v19 = vpop.f32.mrb[27].mxu1  ;;  %v3164_v7 = vadd.f32 %v4092_v6, %v3097_v22  ;;  %v2468_v23 = vsel %vm1443_vm11, %v2416_v5, 0.0  ;;  %v2472_v34 = vsel %vm1443_vm11, %v2418_v12, 0.0 }
 0x1de   : > { %v2318_v3 = vadd.f32 %v3163_v37, %v3986_v33  ;;  %v3165_v1 = vadd.f32 %v4096_v20, %v1991_v19  ;;  %2650 = vst.msk [vmem:[%s3996_s17 + $0x54] sm:$0xf] %vm2628_vm8, %v2893_v21  ;;  %v2370_v15 = vadd.f32 %v2369_v26, %v2368_v54  ;;  %v2469_v18 = vadd.f32 %v2468_v23, %v2467_v0 }
 0x1df   : > { %v2898_v11 = vpack.c.bf16 %v2320_v4, %v2320_v4  ;;  %v2321_v2 = vadd.f32 %v3164_v7, %v3986_v33  ;;  %v2377_v35 = vsel %vm1443_vm11, %v2320_v4, 0.0  ;;  %v2421_v24 = vmul.f32 %v2320_v4, %v2320_v4 }
 0x1e0   : > { %v2419_v63 = vmul.f32 %v2318_v3, %v2318_v3  ;;  %v2373_v6 = vsel %vm1443_vm11, %v2318_v3, 0.0  ;;  %v2896_v20 = vpack.c.bf16 %v2318_v3, %v2318_v3  ;;  %v2319_v27 = vadd.f32 %v3165_v1, %v3986_v33 }
 0x1e1   : > { %2655 = vst.msk [vmem:[%s3996_s17 + $0x68] sm:$0xf] %vm2628_vm8, %v2898_v11  ;;  %v2471_v28 = vadd.f32 %v2470_v58, %v2469_v18  ;;  %v2372_v32 = vadd.f32 %v2371_v29, %v2370_v15  ;;  %v2899_v46 = vpack.c.bf16 %v2321_v2, %v2321_v2  ;;  %v2422_v14 = vmul.f32 %v2321_v2, %v2321_v2 }
 0x1e2   : > { %v3100_v42 = vpop.f32.mrb[28].mxu1  ;;  %v2474_v36 = vsel %vm1443_vm11, %v2419_v63, 0.0  ;;  %2653 = vst.msk [vmem:[%s3996_s17 + $0x60] sm:$0xf] %vm2628_vm8, %v2896_v20  ;;  %v2375_v30 = vsel %vm1443_vm11, %v2319_v27, 0.0  ;;  %v2420_v17 = vmul.f32 %v2319_v27, %v2319_v27  ;;  %v2897_v9 = vpack.c.bf16 %v2319_v27, %v2319_v27 }
 0x1e3   : > { %v2004_v39 = vpop.f32.mrb[29].mxu1  ;;  %v2374_v44 = vadd.f32 %v2373_v6, %v2372_v32  ;;  %v2473_v45 = vadd.f32 %v2472_v34, %v2471_v28  ;;  %2656 = vst.msk [vmem:[%s3996_s17 + $0x6c] sm:$0xf] %vm2628_vm8, %v2899_v46  ;;  %v3166_v50 = vadd.f32 %v4111_v48, %v3100_v42  ;;  %v2478_v61 = vsel %vm1443_vm11, %v2421_v24, 0.0 }
 0x1e4   : > { %v3101_v49 = vpop.f32.mrb[30].mxu1  ;;  %v3167_v40 = vadd.f32 %v4116_v8, %v2004_v39  ;;  %v2476_v59 = vsel %vm1443_vm11, %v2420_v17, 0.0  ;;  %2654 = vst.msk [vmem:[%s3996_s17 + $0x64] sm:$0xf] %vm2628_vm8, %v2897_v9  ;;  %v2379_v62 = vsel %vm1443_vm11, %v2321_v2, 0.0  ;;  %v2480_v0 = vsel %vm1443_vm11, %v2422_v14, 0.0 }
 0x1e5   : > { %v3168_v25 = vadd.f32 %v4119_v16, %v3101_v49  ;;  %v2007_v51 = vpop.f32.mrb[31].mxu1  ;;  %v2475_v53 = vadd.f32 %v2474_v36, %v2473_v45  ;;  %v2376_v31 = vadd.f32 %v2375_v30, %v2374_v44  ;;  %v2324_v56 = vadd.f32 %v3166_v50, %v3986_v33 }
 0x1e6   : > { %v3169_v13 = vadd.f32 %v4123_v47, %v2007_v51  ;;  %v2322_v60 = vadd.f32 %v3167_v40, %v3986_v33 }
 0x1e7   : > { %v2325_v48 = vadd.f32 %v3168_v25, %v3986_v33  ;;  %v2378_v8 = vadd.f32 %v2377_v35, %v2376_v31  ;;  %v2477_v52 = vadd.f32 %v2476_v59, %v2475_v53  ;;  %v2902_v55 = vpack.c.bf16 %v2324_v56, %v2324_v56 }
 0x1e8   : > { %v2323_v16 = vadd.f32 %v3169_v13, %v3986_v33  ;;  %v2381_v47 = vsel %vm1443_vm11, %v2322_v60, 0.0  ;;  %v2423_v43 = vmul.f32 %v2322_v60, %v2322_v60  ;;  %v2900_v57 = vpack.c.bf16 %v2322_v60, %v2322_v60 }
 0x1e9   : > { %v2479_v38 = vadd.f32 %v2478_v61, %v2477_v52  ;;  %v2380_v10 = vadd.f32 %v2379_v62, %v2378_v8  ;;  %2659 = vst.msk [vmem:[%s3996_s17 + $0x78] sm:$0xf] %vm2628_vm8, %v2902_v55  ;;  %v2903_v12 = vpack.c.bf16 %v2325_v48, %v2325_v48  ;;  %v2425_v5 = vmul.f32 %v2324_v56, %v2324_v56 }
 0x1ea   : > { %v2482_v22 = vsel %vm1443_vm11, %v2423_v43, 0.0  ;;  %2657 = vst.msk [vmem:[%s3996_s17 + $0x70] sm:$0xf] %vm2628_vm8, %v2900_v57  ;;  %v2383_v41 = vsel %vm1443_vm11, %v2323_v16, 0.0  ;;  %v2424_v21 = vmul.f32 %v2323_v16, %v2323_v16  ;;  %v2901_v4 = vpack.c.bf16 %v2323_v16, %v2323_v16 }
 0x1eb   : > { %v2382_v37 = vadd.f32 %v2381_v47, %v2380_v10  ;;  %v2481_v33 = vadd.f32 %v2480_v0, %v2479_v38  ;;  %2660 = vst.msk [vmem:[%s3996_s17 + $0x7c] sm:$0xf] %vm2628_vm8, %v2903_v12  ;;  %v2385_v3 = vsel %vm1443_vm11, %v2324_v56, 0.0  ;;  %v2426_v7 = vmul.f32 %v2325_v48, %v2325_v48 }
 0x1ec   : > { %v2484_v1 = vsel %vm1443_vm11, %v2424_v21, 0.0  ;;  %2658 = vst.msk [vmem:[%s3996_s17 + $0x74] sm:$0xf] %vm2628_vm8, %v2901_v4  ;;  %v2486_v23 = vsel %vm1443_vm11, %v2425_v5, 0.0  ;;  %v2387_v11 = vsel %vm1443_vm11, %v2325_v48, 0.0 }
 0x1ed   : > { %v2483_v19 = vadd.f32 %v2482_v22, %v2481_v33  ;;  %v2384_v54 = vadd.f32 %v2383_v41, %v2382_v37  ;;  %v2488_v18 = vsel %vm1443_vm11, %v2426_v7, 0.0  ;;  %vm2498_vm11 = vcmask 25600  }
 0x1ef   : > { %v2386_v26 = vadd.f32 %v2385_v3, %v2384_v54  ;;  %v2485_v58 = vadd.f32 %v2484_v1, %v2483_v19 }
 0x1f1   : > { %v2388_v29 = vadd.f32 %v2387_v11, %v2386_v26  ;;  %v2487_v15 = vadd.f32 %v2486_v23, %v2485_v58 }
 0x1f3   : > { %v2389_v63 = vrot.slane %v2388_v29, 4  ;;  %v2489_v6 = vadd.f32 %v2488_v18, %v2487_v15 }
 0x1f5   : > { %v2390_v20 = vadd.f32 %v2389_v63, %v2388_v29  ;;  %v2490_v2 = vrot.slane %v2489_v6, 4 }
 0x1f7   : > { %v2391_v27 = vrot.slane %v2390_v20, 2  ;;  %v2491_v34 = vadd.f32 %v2490_v2, %v2489_v6 }
 0x1f9   : > { %v2392_v28 = vadd.f32 %v2391_v27, %v2390_v20  ;;  %v2492_v32 = vrot.slane %v2491_v34, 2 }
 0x1fb   : > { %v2393_v42 = vrot.slane %v2392_v28, 1  ;;  %v2493_v35 = vadd.f32 %v2492_v32, %v2491_v34 }
 0x1fd   : > { %v2494_v36 = vrot.slane %v2493_v35, 1  ;;  %v2394_v46 = vadd.f32 %v2393_v42, %v2392_v28 }
 0x1ff   : > { %v2495_v30 = vadd.f32 %v2494_v36, %v2493_v35 }
 0x201   : > { %v2497_v39 = vsel %vm1163_vm9, %v2394_v46, %v2495_v30 }
 0x202   : > { %2499 = vst.msk [vmem:[%s252_s19] sm:$0x3] %vm2498_vm11, %v2497_v39 }
 0x203   : > { %3264 = shalt.err (!%p3261_p3)
}
 0x204   : > { %s3265_s15 = scalar_lea.hbm %s4194_s29, 32  ;;  %s3269_s9 = scalar_lea.hbm %s4243_s6, 64 }
 0x205   : > { %p3266_p4 = scmp.ne.s32.totalorder %s4194_s29, %s3265_s15  ;;  %p3270_p9 = scmp.lt.u32.totalorder %s4194_s29, %s4243_s6 }
 0x206   : > { %p3271_p10 = scmp.lt.u32.totalorder %s3269_s9, %s3265_s15  ;;  %p3273_p12 = scmp.lt.u32.totalorder %s3265_s15, %s4194_s29 }
 0x207   : > { %p3267_p7 = pnand %p3266_p4, %p3392_p5 }
 0x208   : > { %p3272_p11 = por %p3271_p10, %p3270_p9 }
 0x209   : > { %p3268_p8 = pneg %p3267_p7 }
 0x20a   : > { %p3274_p13 = por %p3273_p12, %p3272_p11 }
 0x20c   : > { %p3275_p0 = pnand %p3274_p13, %p3268_p8 }
 0x20e   : > { %3278 = shalt.err (!%p3275_p0)
}
 0x20f   : > { %3206 = dma.vmem_to_hbm [thread:$0]  (%p3392_p5), %s4196_s20, 32, %s4194_s29, %s2667_s11  }
 0x210 PF: > { %p3212_p1 = scmp.ge.s32.totalorder %s3313_s24, 2  ;;  %s2703_s19 = sand.u32 1, %s3301_s21  }
 0x211   : > { %s2704_s26 = scalar_lea.sflag [#allocation4], %s2703_s19 }
 0x212   : > { %p3209_p2 = pnand %p3212_p1, %p3396_p6 }
 0x214   : > { %3296 = dma.done.wait (!%p3209_p2), %s2704_s26, 32  }
 0x215   : > { %3298 = vsyncadd (!%p3209_p2), %s2704_s26, 4294967264  ;;  %p17_p3 = scmp.ge.s32.totalorder %s3379_s27, 4   ;;  %s4274_s21 = smov %s3305_s22 }
 0x216   : > { %s4275_s22 = smov %s3309_s23  ;;  %s4276_s23 = smov %s3390_s30 }
 0x217   : > { %s4277_s24 = smov %s3379_s27  ;;  %19 = sbr.rel (!%p17_p3) target bundleno = 3 (0x3), region = 89 }
 0x21e   :  { %2709 = vsyncpa [#allocation4], 1 }
 0x21f   :  { %2711 = vsyncpa [#allocation4 + $0x1], 1 }

</bundles_post_ra>
